<compile_context>
chip_gen: v6e
topology: v6e:2x2x1
jax: 0.10.0
libtpu: 0.0.40
codegen_flags: <defaults>
</compile_context>

<pallas_src>
import functools

import jax
import jax.numpy as jnp
from jax.experimental import pallas as pl
from jax.experimental.pallas import tpu as pltpu


def _relu(x):
    return jnp.maximum(x, 0.0)


def _mm(a, w, bf16):
    if bf16:
        a = a.astype(jnp.bfloat16)
        w = w.astype(jnp.bfloat16)
    return jnp.dot(a, w, preferred_element_type=jnp.float32)


def pointnet_kernel(p_ref,
                    wpos_ref, bpos_ref,
                    w0_ref, b0_ref,
                    w1t_ref, w1b_ref, b1_ref,
                    w2t_ref, w2b_ref, b2_ref,
                    w3t_ref, w3b_ref, b3_ref,
                    wc_ref, bc_ref,
                    out_ref,
                    *, matmul_bf16=False):
    Bb, T, D = p_ref.shape
    h = w0_ref.shape[1]

    # fc_pos / fc_0 on the flattened (Bb*T, .) slab.
    x = p_ref[...].reshape(Bb * T, D)
    net = _mm(x, wpos_ref[...], matmul_bf16) + bpos_ref[...]          # (Bb*T, 2h)
    net = _mm(_relu(net), w0_ref[...], matmul_bf16) + b0_ref[...]     # (Bb*T, h)
    net = net.reshape(Bb, T, h)

    # Three rounds of: per-cloud max-pool, split-weight Linear.
    # relu(cat(net, pooled)) @ w + b == relu(net) @ w_top
    #                                   + broadcast(relu(pooled) @ w_bot + b)
    for wt_ref, wb_ref, b_ref in ((w1t_ref, w1b_ref, b1_ref),
                                  (w2t_ref, w2b_ref, b2_ref),
                                  (w3t_ref, w3b_ref, b3_ref)):
        pooled = jnp.max(net, axis=1)                                  # (Bb, h)
        pool_term = _mm(_relu(pooled), wb_ref[...], matmul_bf16) + b_ref[...]
        top = _mm(_relu(net.reshape(Bb * T, h)), wt_ref[...], matmul_bf16)
        net = top.reshape(Bb, T, h) + pool_term[:, None, :]            # (Bb, T, h)

    # Final pool over points + fc_c (columns zero-padded to 128 lanes).
    pooled = jnp.max(net, axis=1)                                      # (Bb, h)
    c = _mm(_relu(pooled), wc_ref[...], matmul_bf16) + bc_ref[...]     # (Bb, c_pad)
    out_ref[0] = c


def _choose_block_b(B, T_pad, target_rows):
    bb = max(1, target_rows // T_pad)
    if B > 1:
        bb = min(bb, (B + 1) // 2)   # keep >= 2 grid steps (v7x has 2 TCs)
    return max(1, min(bb, B))


def simple_pointnet_forward(p, params, *, block_b=None, target_rows=256,
                            matmul_bf16=False):
    """p: (B, T, D) float32. params: dict of pre-transposed weights/biases."""
    B, T, D = p.shape
    h = params["w0"].shape[1]
    c_dim = params["wc"].shape[1]

    # Pad T to a multiple of 8 by replicating the last point: replicated rows
    # produce identical features, so every max-pool (and the output) is
    # unchanged, while the (Bb, T, h) <-> (Bb*T, h) reshapes stay on clean
    # sublane tiles.
    T_pad = pl.cdiv(T, 8) * 8
    if T_pad != T:
        p = jnp.concatenate(
            [p, jnp.repeat(p[:, -1:, :], T_pad - T, axis=1)], axis=1)

    if block_b is None:
        block_b = _choose_block_b(B, T_pad, target_rows)
    Bb = int(block_b)
    n_blocks = pl.cdiv(B, Bb)
    B_pad = n_blocks * Bb
    if B_pad != B:   # pad with zero clouds; their outputs are sliced off
        p = jnp.concatenate(
            [p, jnp.zeros((B_pad - B, T_pad, D), p.dtype)], axis=0)

    # Split the concat-layer weights (stored as (2h, h)) into top/bottom halves.
    w1t, w1b = params["w1"][:h], params["w1"][h:]
    w2t, w2b = params["w2"][:h], params["w2"][h:]
    w3t, w3b = params["w3"][:h], params["w3"][h:]

    # Zero-pad fc_c output columns to a multiple of 128 -> unmasked stores.
    c_pad = pl.cdiv(c_dim, 128) * 128
    wc, bc = params["wc"], params["bc"]
    if c_pad != c_dim:
        wc = jnp.pad(wc, ((0, 0), (0, c_pad - c_dim)))
        bc = jnp.pad(bc, ((0, 0), (0, c_pad - c_dim)))

    weight_args = (params["wpos"], params["bpos"],
                   params["w0"], params["b0"],
                   w1t, w1b, params["b1"],
                   w2t, w2b, params["b2"],
                   w3t, w3b, params["b3"],
                   wc, bc)

    def full_spec(a):
        # whole (small) weight / bias resident in VMEM, same block every step
        return pl.BlockSpec(a.shape, lambda g: (0,) * a.ndim)

    in_specs = [pl.BlockSpec((Bb, T_pad, D), lambda g: (g, 0, 0))]
    in_specs += [full_spec(a) for a in weight_args]
    out_spec = pl.BlockSpec((1, Bb, c_pad), lambda g: (g, 0, 0))

    kernel = functools.partial(pointnet_kernel, matmul_bf16=matmul_bf16)

    out = pl.pallas_call(
        kernel,
        out_shape=jax.ShapeDtypeStruct((n_blocks, Bb, c_pad), jnp.float32),
        grid_spec=pltpu.PrefetchScalarGridSpec(
            num_scalar_prefetch=0,
            grid=(n_blocks,),
            in_specs=in_specs,
            out_specs=out_spec,
        ),
        compiler_params=pltpu.CompilerParams(
            dimension_semantics=("parallel",),
            vmem_limit_bytes=32 * 1024 * 1024,
        ),
    )(p, *weight_args)

    return out.reshape(B_pad, c_pad)[:B, :c_dim]


def init_params(key, dim=3, hidden_dim=32, c_dim=16):
    """Deterministic synthetic parameters. Shapes mirror the torch module,
    but stored pre-transposed as (in, out); biases as (1, out)."""
    ks = jax.random.split(key, 12)

    def lin(kw, kb, n_in, n_out):
        bound = 1.0 / jnp.sqrt(n_in)
        w = jax.random.uniform(kw, (n_in, n_out), jnp.float32, -bound, bound)
        b = jax.random.uniform(kb, (1, n_out), jnp.float32, -bound, bound)
        return w, b

    h, h2 = hidden_dim, 2 * hidden_dim
    wpos, bpos = lin(ks[0], ks[1], dim, h2)
    w0, b0 = lin(ks[2], ks[3], h2, h)
    w1, b1 = lin(ks[4], ks[5], h2, h)
    w2, b2 = lin(ks[6], ks[7], h2, h)
    w3, b3 = lin(ks[8], ks[9], h2, h)
    wc, bc = lin(ks[10], ks[11], h, c_dim)
    return dict(wpos=wpos, bpos=bpos, w0=w0, b0=b0, w1=w1, b1=b1,
                w2=w2, b2=b2, w3=w3, b3=b3, wc=wc, bc=bc)


def reference_forward(p, params):
    """Pure-JAX reference mirroring the PyTorch forward exactly."""
    hp = jax.lax.Precision.HIGHEST

    def lin(x, w, b):
        return jnp.dot(x, w, precision=hp) + b

    net = lin(p, params["wpos"], params["bpos"])
    net = lin(jax.nn.relu(net), params["w0"], params["b0"])
    for w, b in ((params["w1"], params["b1"]),
                 (params["w2"], params["b2"]),
                 (params["w3"], params["b3"])):
        pooled = jnp.max(net, axis=1, keepdims=True)
        pooled = jnp.broadcast_to(pooled, net.shape)
        net = jnp.concatenate([net, pooled], axis=2)
        net = lin(jax.nn.relu(net), w, b)
    net = jnp.max(net, axis=1)
    return lin(jax.nn.relu(net), params["wc"], params["bc"])


if __name__ == "__main__":
    # Small but non-trivial shapes: exercises T padding (100 -> 104) and batch
    # padding (5 clouds -> 3 grid steps of Bb=2).
    B, T, D = 5, 100, 3
    hidden_dim, c_dim = 32, 16

    key = jax.random.PRNGKey(0)
    k_p, k_params = jax.random.split(key)
    p = jax.random.normal(k_p, (B, T, D), dtype=jnp.float32)
    params = init_params(k_params, dim=D, hidden_dim=hidden_dim, c_dim=c_dim)

    out = simple_pointnet_forward(p, params)
    out = jax.block_until_ready(out)

    ref = reference_forward(p, params)
    assert out.shape == (B, c_dim)
    assert jnp.allclose(out, ref, atol=1e-4, rtol=1e-4), "mismatch vs reference"

    print("KERNEL_OK")
</pallas_src>

<mosaic_0001>
module attributes {stable_mosaic.version = 11 : i64} {
  func.func @pointnet_kernel(%arg0: i32, %arg1: memref<2x104x3xf32, #tpu.memory_space<vmem>>, %arg2: memref<3x64xf32, #tpu.memory_space<vmem>>, %arg3: memref<1x64xf32, #tpu.memory_space<vmem>>, %arg4: memref<64x32xf32, #tpu.memory_space<vmem>>, %arg5: memref<1x32xf32, #tpu.memory_space<vmem>>, %arg6: memref<32x32xf32, #tpu.memory_space<vmem>>, %arg7: memref<32x32xf32, #tpu.memory_space<vmem>>, %arg8: memref<1x32xf32, #tpu.memory_space<vmem>>, %arg9: memref<32x32xf32, #tpu.memory_space<vmem>>, %arg10: memref<32x32xf32, #tpu.memory_space<vmem>>, %arg11: memref<1x32xf32, #tpu.memory_space<vmem>>, %arg12: memref<32x32xf32, #tpu.memory_space<vmem>>, %arg13: memref<32x32xf32, #tpu.memory_space<vmem>>, %arg14: memref<1x32xf32, #tpu.memory_space<vmem>>, %arg15: memref<32x128xf32, #tpu.memory_space<vmem>>, %arg16: memref<1x128xf32, #tpu.memory_space<vmem>>, %arg17: memref<1x2x128xf32, #tpu.memory_space<vmem>>) attributes {dimension_semantics = [#tpu.dimension_semantics<parallel>], iteration_bounds = array<i64: 3>, scalar_prefetch = 0 : i64, scratch_operands = 0 : i64, tpu.core_type = #tpu.core_type<tc>, window_params = [{transform_indices = @transform_0, window_bounds = array<i64: 2, 104, 3>}, {pipeline_mode = #tpu.pipeline_mode<synchronous>, transform_indices = @transform_1, window_bounds = array<i64: 3, 64>}, {pipeline_mode = #tpu.pipeline_mode<synchronous>, transform_indices = @transform_2, window_bounds = array<i64: 1, 64>}, {pipeline_mode = #tpu.pipeline_mode<synchronous>, transform_indices = @transform_3, window_bounds = array<i64: 64, 32>}, {pipeline_mode = #tpu.pipeline_mode<synchronous>, transform_indices = @transform_4, window_bounds = array<i64: 1, 32>}, {pipeline_mode = #tpu.pipeline_mode<synchronous>, transform_indices = @transform_5, window_bounds = array<i64: 32, 32>}, {pipeline_mode = #tpu.pipeline_mode<synchronous>, transform_indices = @transform_6, window_bounds = array<i64: 32, 32>}, {pipeline_mode = #tpu.pipeline_mode<synchronous>, transform_indices = @transform_7, window_bounds = array<i64: 1, 32>}, {pipeline_mode = #tpu.pipeline_mode<synchronous>, transform_indices = @transform_8, window_bounds = array<i64: 32, 32>}, {pipeline_mode = #tpu.pipeline_mode<synchronous>, transform_indices = @transform_9, window_bounds = array<i64: 32, 32>}, {pipeline_mode = #tpu.pipeline_mode<synchronous>, transform_indices = @transform_10, window_bounds = array<i64: 1, 32>}, {pipeline_mode = #tpu.pipeline_mode<synchronous>, transform_indices = @transform_11, window_bounds = array<i64: 32, 32>}, {pipeline_mode = #tpu.pipeline_mode<synchronous>, transform_indices = @transform_12, window_bounds = array<i64: 32, 32>}, {pipeline_mode = #tpu.pipeline_mode<synchronous>, transform_indices = @transform_13, window_bounds = array<i64: 1, 32>}, {pipeline_mode = #tpu.pipeline_mode<synchronous>, transform_indices = @transform_14, window_bounds = array<i64: 32, 128>}, {pipeline_mode = #tpu.pipeline_mode<synchronous>, transform_indices = @transform_15, window_bounds = array<i64: 1, 128>}, {transform_indices = @transform_16, window_bounds = array<i64: 1, 2, 128>}]} {
    %c0 = arith.constant 0 : index
    %c0_0 = arith.constant 0 : index
    %c0_1 = arith.constant 0 : index
    %0 = vector.load %arg1[%c0, %c0_0, %c0_1] : memref<2x104x3xf32, #tpu.memory_space<vmem>>, vector<2x104x3xf32>
    %1 = vector.shape_cast %0 : vector<2x104x3xf32> to vector<208x3xf32>
    %c0_2 = arith.constant 0 : index
    %c0_3 = arith.constant 0 : index
    %2 = vector.load %arg2[%c0_2, %c0_3] : memref<3x64xf32, #tpu.memory_space<vmem>>, vector<3x64xf32>
    %cst = arith.constant dense<0.000000e+00> : vector<208x64xf32>
    %3 = tpu.matmul %1, %2, %cst {dimension_numbers = #tpu.dot_dimension_numbers<[1], [0], [0], [1], [0, 0, 1, 1], [], []>} : vector<208x3xf32>, vector<3x64xf32>, vector<208x64xf32> -> vector<208x64xf32>
    %c0_4 = arith.constant 0 : index
    %c0_5 = arith.constant 0 : index
    %4 = vector.load %arg3[%c0_4, %c0_5] : memref<1x64xf32, #tpu.memory_space<vmem>>, vector<1x64xf32>
    %5 = vector.broadcast %4 : vector<1x64xf32> to vector<208x64xf32>
    %6 = arith.addf %3, %5 : vector<208x64xf32>
    %cst_6 = arith.constant 0.000000e+00 : f32
    %7 = vector.broadcast %cst_6 : f32 to vector<208x64xf32>
    %8 = arith.maximumf %6, %7 : vector<208x64xf32>
    %c0_7 = arith.constant 0 : index
    %c0_8 = arith.constant 0 : index
    %9 = vector.load %arg4[%c0_7, %c0_8] : memref<64x32xf32, #tpu.memory_space<vmem>>, vector<64x32xf32>
    %cst_9 = arith.constant dense<0.000000e+00> : vector<208x32xf32>
    %10 = tpu.matmul %8, %9, %cst_9 {dimension_numbers = #tpu.dot_dimension_numbers<[1], [0], [0], [1], [0, 0, 1, 1], [], []>} : vector<208x64xf32>, vector<64x32xf32>, vector<208x32xf32> -> vector<208x32xf32>
    %c0_10 = arith.constant 0 : index
    %c0_11 = arith.constant 0 : index
    %11 = vector.load %arg5[%c0_10, %c0_11] : memref<1x32xf32, #tpu.memory_space<vmem>>, vector<1x32xf32>
    %12 = vector.broadcast %11 : vector<1x32xf32> to vector<208x32xf32>
    %13 = arith.addf %10, %12 : vector<208x32xf32>
    %14 = vector.shape_cast %13 : vector<208x32xf32> to vector<2x104x32xf32>
    %cst_12 = arith.constant dense<0xFF800000> : vector<2x32xf32>
    %15 = vector.multi_reduction <maximumf>, %14, %cst_12 [1] : vector<2x104x32xf32> to vector<2x32xf32>
    %cst_13 = arith.constant 0.000000e+00 : f32
    %16 = vector.broadcast %cst_13 : f32 to vector<2x32xf32>
    %17 = arith.maximumf %15, %16 : vector<2x32xf32>
    %c0_14 = arith.constant 0 : index
    %c0_15 = arith.constant 0 : index
    %18 = vector.load %arg7[%c0_14, %c0_15] : memref<32x32xf32, #tpu.memory_space<vmem>>, vector<32x32xf32>
    %cst_16 = arith.constant dense<0.000000e+00> : vector<2x32xf32>
    %19 = tpu.matmul %17, %18, %cst_16 {dimension_numbers = #tpu.dot_dimension_numbers<[1], [0], [0], [1], [0, 0, 1, 1], [], []>} : vector<2x32xf32>, vector<32x32xf32>, vector<2x32xf32> -> vector<2x32xf32>
    %c0_17 = arith.constant 0 : index
    %c0_18 = arith.constant 0 : index
    %20 = vector.load %arg8[%c0_17, %c0_18] : memref<1x32xf32, #tpu.memory_space<vmem>>, vector<1x32xf32>
    %21 = vector.broadcast %20 : vector<1x32xf32> to vector<2x32xf32>
    %22 = arith.addf %19, %21 : vector<2x32xf32>
    %23 = vector.shape_cast %14 : vector<2x104x32xf32> to vector<208x32xf32>
    %cst_19 = arith.constant 0.000000e+00 : f32
    %24 = vector.broadcast %cst_19 : f32 to vector<208x32xf32>
    %25 = arith.maximumf %23, %24 : vector<208x32xf32>
    %c0_20 = arith.constant 0 : index
    %c0_21 = arith.constant 0 : index
    %26 = vector.load %arg6[%c0_20, %c0_21] : memref<32x32xf32, #tpu.memory_space<vmem>>, vector<32x32xf32>
    %cst_22 = arith.constant dense<0.000000e+00> : vector<208x32xf32>
    %27 = tpu.matmul %25, %26, %cst_22 {dimension_numbers = #tpu.dot_dimension_numbers<[1], [0], [0], [1], [0, 0, 1, 1], [], []>} : vector<208x32xf32>, vector<32x32xf32>, vector<208x32xf32> -> vector<208x32xf32>
    %28 = vector.shape_cast %27 : vector<208x32xf32> to vector<2x104x32xf32>
    %29 = vector.shape_cast %22 : vector<2x32xf32> to vector<2x1x32xf32>
    %30 = vector.broadcast %29 : vector<2x1x32xf32> to vector<2x104x32xf32>
    %31 = arith.addf %28, %30 : vector<2x104x32xf32>
    %cst_23 = arith.constant dense<0xFF800000> : vector<2x32xf32>
    %32 = vector.multi_reduction <maximumf>, %31, %cst_23 [1] : vector<2x104x32xf32> to vector<2x32xf32>
    %cst_24 = arith.constant 0.000000e+00 : f32
    %33 = vector.broadcast %cst_24 : f32 to vector<2x32xf32>
    %34 = arith.maximumf %32, %33 : vector<2x32xf32>
    %c0_25 = arith.constant 0 : index
    %c0_26 = arith.constant 0 : index
    %35 = vector.load %arg10[%c0_25, %c0_26] : memref<32x32xf32, #tpu.memory_space<vmem>>, vector<32x32xf32>
    %cst_27 = arith.constant dense<0.000000e+00> : vector<2x32xf32>
    %36 = tpu.matmul %34, %35, %cst_27 {dimension_numbers = #tpu.dot_dimension_numbers<[1], [0], [0], [1], [0, 0, 1, 1], [], []>} : vector<2x32xf32>, vector<32x32xf32>, vector<2x32xf32> -> vector<2x32xf32>
    %c0_28 = arith.constant 0 : index
    %c0_29 = arith.constant 0 : index
    %37 = vector.load %arg11[%c0_28, %c0_29] : memref<1x32xf32, #tpu.memory_space<vmem>>, vector<1x32xf32>
    %38 = vector.broadcast %37 : vector<1x32xf32> to vector<2x32xf32>
    %39 = arith.addf %36, %38 : vector<2x32xf32>
    %40 = vector.shape_cast %31 : vector<2x104x32xf32> to vector<208x32xf32>
    %cst_30 = arith.constant 0.000000e+00 : f32
    %41 = vector.broadcast %cst_30 : f32 to vector<208x32xf32>
    %42 = arith.maximumf %40, %41 : vector<208x32xf32>
    %c0_31 = arith.constant 0 : index
    %c0_32 = arith.constant 0 : index
    %43 = vector.load %arg9[%c0_31, %c0_32] : memref<32x32xf32, #tpu.memory_space<vmem>>, vector<32x32xf32>
    %cst_33 = arith.constant dense<0.000000e+00> : vector<208x32xf32>
    %44 = tpu.matmul %42, %43, %cst_33 {dimension_numbers = #tpu.dot_dimension_numbers<[1], [0], [0], [1], [0, 0, 1, 1], [], []>} : vector<208x32xf32>, vector<32x32xf32>, vector<208x32xf32> -> vector<208x32xf32>
    %45 = vector.shape_cast %44 : vector<208x32xf32> to vector<2x104x32xf32>
    %46 = vector.shape_cast %39 : vector<2x32xf32> to vector<2x1x32xf32>
    %47 = vector.broadcast %46 : vector<2x1x32xf32> to vector<2x104x32xf32>
    %48 = arith.addf %45, %47 : vector<2x104x32xf32>
    %cst_34 = arith.constant dense<0xFF800000> : vector<2x32xf32>
    %49 = vector.multi_reduction <maximumf>, %48, %cst_34 [1] : vector<2x104x32xf32> to vector<2x32xf32>
    %cst_35 = arith.constant 0.000000e+00 : f32
    %50 = vector.broadcast %cst_35 : f32 to vector<2x32xf32>
    %51 = arith.maximumf %49, %50 : vector<2x32xf32>
    %c0_36 = arith.constant 0 : index
    %c0_37 = arith.constant 0 : index
    %52 = vector.load %arg13[%c0_36, %c0_37] : memref<32x32xf32, #tpu.memory_space<vmem>>, vector<32x32xf32>
    %cst_38 = arith.constant dense<0.000000e+00> : vector<2x32xf32>
    %53 = tpu.matmul %51, %52, %cst_38 {dimension_numbers = #tpu.dot_dimension_numbers<[1], [0], [0], [1], [0, 0, 1, 1], [], []>} : vector<2x32xf32>, vector<32x32xf32>, vector<2x32xf32> -> vector<2x32xf32>
    %c0_39 = arith.constant 0 : index
    %c0_40 = arith.constant 0 : index
    %54 = vector.load %arg14[%c0_39, %c0_40] : memref<1x32xf32, #tpu.memory_space<vmem>>, vector<1x32xf32>
    %55 = vector.broadcast %54 : vector<1x32xf32> to vector<2x32xf32>
    %56 = arith.addf %53, %55 : vector<2x32xf32>
    %57 = vector.shape_cast %48 : vector<2x104x32xf32> to vector<208x32xf32>
    %cst_41 = arith.constant 0.000000e+00 : f32
    %58 = vector.broadcast %cst_41 : f32 to vector<208x32xf32>
    %59 = arith.maximumf %57, %58 : vector<208x32xf32>
    %c0_42 = arith.constant 0 : index
    %c0_43 = arith.constant 0 : index
    %60 = vector.load %arg12[%c0_42, %c0_43] : memref<32x32xf32, #tpu.memory_space<vmem>>, vector<32x32xf32>
    %cst_44 = arith.constant dense<0.000000e+00> : vector<208x32xf32>
    %61 = tpu.matmul %59, %60, %cst_44 {dimension_numbers = #tpu.dot_dimension_numbers<[1], [0], [0], [1], [0, 0, 1, 1], [], []>} : vector<208x32xf32>, vector<32x32xf32>, vector<208x32xf32> -> vector<208x32xf32>
    %62 = vector.shape_cast %61 : vector<208x32xf32> to vector<2x104x32xf32>
    %63 = vector.shape_cast %56 : vector<2x32xf32> to vector<2x1x32xf32>
    %64 = vector.broadcast %63 : vector<2x1x32xf32> to vector<2x104x32xf32>
    %65 = arith.addf %62, %64 : vector<2x104x32xf32>
    %cst_45 = arith.constant dense<0xFF800000> : vector<2x32xf32>
    %66 = vector.multi_reduction <maximumf>, %65, %cst_45 [1] : vector<2x104x32xf32> to vector<2x32xf32>
    %cst_46 = arith.constant 0.000000e+00 : f32
    %67 = vector.broadcast %cst_46 : f32 to vector<2x32xf32>
    %68 = arith.maximumf %66, %67 : vector<2x32xf32>
    %c0_47 = arith.constant 0 : index
    %c0_48 = arith.constant 0 : index
    %69 = vector.load %arg15[%c0_47, %c0_48] : memref<32x128xf32, #tpu.memory_space<vmem>>, vector<32x128xf32>
    %cst_49 = arith.constant dense<0.000000e+00> : vector<2x128xf32>
    %70 = tpu.matmul %68, %69, %cst_49 {dimension_numbers = #tpu.dot_dimension_numbers<[1], [0], [0], [1], [0, 0, 1, 1], [], []>} : vector<2x32xf32>, vector<32x128xf32>, vector<2x128xf32> -> vector<2x128xf32>
    %c0_50 = arith.constant 0 : index
    %c0_51 = arith.constant 0 : index
    %71 = vector.load %arg16[%c0_50, %c0_51] : memref<1x128xf32, #tpu.memory_space<vmem>>, vector<1x128xf32>
    %72 = vector.broadcast %71 : vector<1x128xf32> to vector<2x128xf32>
    %73 = arith.addf %70, %72 : vector<2x128xf32>
    %c0_52 = arith.constant 0 : index
    %c0_53 = arith.constant 0 : index
    %c0_54 = arith.constant 0 : index
    %74 = vector.load %arg17[%c0_52, %c0_53, %c0_54] : memref<1x2x128xf32, #tpu.memory_space<vmem>>, vector<1x2x128xf32>
    %75 = vector.shape_cast %74 : vector<1x2x128xf32> to vector<2x128xf32>
    %76 = vector.shape_cast %73 : vector<2x128xf32> to vector<1x2x128xf32>
    tpu.vector_store %arg17[%c0_52, %c0_53, %c0_54], %76 {strides = array<i32>} : memref<1x2x128xf32, #tpu.memory_space<vmem>>, vector<1x2x128xf32>,
    return
  }
  func.func @transform_0(%arg0: i32) -> (i32, i32, i32) {
    %c0_i32 = arith.constant 0 : i32
    %c0_i32_0 = arith.constant 0 : i32
    %c0_i32_1 = arith.constant 0 : i32
    return %arg0, %c0_i32, %c0_i32_0 : i32, i32, i32
  }
  func.func @transform_1(%arg0: i32) -> (i32, i32) {
    %c0_i32 = arith.constant 0 : i32
    %c0_i32_0 = arith.constant 0 : i32
    %c0_i32_1 = arith.constant 0 : i32
    return %c0_i32, %c0_i32_0 : i32, i32
  }
  func.func @transform_2(%arg0: i32) -> (i32, i32) {
    %c0_i32 = arith.constant 0 : i32
    %c0_i32_0 = arith.constant 0 : i32
    %c0_i32_1 = arith.constant 0 : i32
    return %c0_i32, %c0_i32_0 : i32, i32
  }
  func.func @transform_3(%arg0: i32) -> (i32, i32) {
    %c0_i32 = arith.constant 0 : i32
    %c0_i32_0 = arith.constant 0 : i32
    %c0_i32_1 = arith.constant 0 : i32
    return %c0_i32, %c0_i32_0 : i32, i32
  }
  func.func @transform_4(%arg0: i32) -> (i32, i32) {
    %c0_i32 = arith.constant 0 : i32
    %c0_i32_0 = arith.constant 0 : i32
    %c0_i32_1 = arith.constant 0 : i32
    return %c0_i32, %c0_i32_0 : i32, i32
  }
  func.func @transform_5(%arg0: i32) -> (i32, i32) {
    %c0_i32 = arith.constant 0 : i32
    %c0_i32_0 = arith.constant 0 : i32
    %c0_i32_1 = arith.constant 0 : i32
    return %c0_i32, %c0_i32_0 : i32, i32
  }
  func.func @transform_6(%arg0: i32) -> (i32, i32) {
    %c0_i32 = arith.constant 0 : i32
    %c0_i32_0 = arith.constant 0 : i32
    %c0_i32_1 = arith.constant 0 : i32
    return %c0_i32, %c0_i32_0 : i32, i32
  }
  func.func @transform_7(%arg0: i32) -> (i32, i32) {
    %c0_i32 = arith.constant 0 : i32
    %c0_i32_0 = arith.constant 0 : i32
    %c0_i32_1 = arith.constant 0 : i32
    return %c0_i32, %c0_i32_0 : i32, i32
  }
  func.func @transform_8(%arg0: i32) -> (i32, i32) {
    %c0_i32 = arith.constant 0 : i32
    %c0_i32_0 = arith.constant 0 : i32
    %c0_i32_1 = arith.constant 0 : i32
    return %c0_i32, %c0_i32_0 : i32, i32
  }
  func.func @transform_9(%arg0: i32) -> (i32, i32) {
    %c0_i32 = arith.constant 0 : i32
    %c0_i32_0 = arith.constant 0 : i32
    %c0_i32_1 = arith.constant 0 : i32
    return %c0_i32, %c0_i32_0 : i32, i32
  }
  func.func @transform_10(%arg0: i32) -> (i32, i32) {
    %c0_i32 = arith.constant 0 : i32
    %c0_i32_0 = arith.constant 0 : i32
    %c0_i32_1 = arith.constant 0 : i32
    return %c0_i32, %c0_i32_0 : i32, i32
  }
  func.func @transform_11(%arg0: i32) -> (i32, i32) {
    %c0_i32 = arith.constant 0 : i32
    %c0_i32_0 = arith.constant 0 : i32
    %c0_i32_1 = arith.constant 0 : i32
    return %c0_i32, %c0_i32_0 : i32, i32
  }
  func.func @transform_12(%arg0: i32) -> (i32, i32) {
    %c0_i32 = arith.constant 0 : i32
    %c0_i32_0 = arith.constant 0 : i32
    %c0_i32_1 = arith.constant 0 : i32
    return %c0_i32, %c0_i32_0 : i32, i32
  }
  func.func @transform_13(%arg0: i32) -> (i32, i32) {
    %c0_i32 = arith.constant 0 : i32
    %c0_i32_0 = arith.constant 0 : i32
    %c0_i32_1 = arith.constant 0 : i32
    return %c0_i32, %c0_i32_0 : i32, i32
  }
  func.func @transform_14(%arg0: i32) -> (i32, i32) {
    %c0_i32 = arith.constant 0 : i32
    %c0_i32_0 = arith.constant 0 : i32
    %c0_i32_1 = arith.constant 0 : i32
    return %c0_i32, %c0_i32_0 : i32, i32
  }
  func.func @transform_15(%arg0: i32) -> (i32, i32) {
    %c0_i32 = arith.constant 0 : i32
    %c0_i32_0 = arith.constant 0 : i32
    %c0_i32_1 = arith.constant 0 : i32
    return %c0_i32, %c0_i32_0 : i32, i32
  }
  func.func @transform_16(%arg0: i32) -> (i32, i32, i32) {
    %c0_i32 = arith.constant 0 : i32
    %c0_i32_0 = arith.constant 0 : i32
    %c0_i32_1 = arith.constant 0 : i32
    return %arg0, %c0_i32, %c0_i32_0 : i32, i32, i32
  }
}

</mosaic_0001>

<bundles_post_ra>
// kernel: tpu_custom_call.1
= control target key start
LH: loop header
LB: loop body
LE: loop exit
PB: predicated region body
PF: predicated region fallthrough
CT: control target
= control target key end

     0   :  { %s4628_s0 = inlined_call_operand.vmem [shape: f32[6,104,3], index: 0, kind: input, shape index: {}]   ;;  %s4629_s1 = inlined_call_operand.vmem [shape: f32[3,64], index: 1, kind: input, shape index: {}]   ;;  %s4630_s2 = inlined_call_operand.vmem [shape: f32[1,64], index: 2, kind: input, shape index: {}]   ;;  %s4631_s3 = inlined_call_operand.vmem [shape: f32[64,32], index: 3, kind: input, shape index: {}]   ;;  %s4632_s4 = inlined_call_operand.vmem [shape: f32[1,32], index: 4, kind: input, shape index: {}]   ;;  %s4633_s5 = inlined_call_operand.vmem [shape: f32[32,32], index: 5, kind: input, shape index: {}]   ;;  %s4634_s6 = inlined_call_operand.vmem [shape: f32[32,32], index: 6, kind: input, shape index: {}]   ;;  %s4635_s7 = inlined_call_operand.vmem [shape: f32[1,32], index: 7, kind: input, shape index: {}]   ;;  %s4636_s8 = inlined_call_operand.vmem [shape: f32[32,32], index: 8, kind: input, shape index: {}]   ;;  %s4637_s9 = inlined_call_operand.vmem [shape: f32[32,32], index: 9, kind: input, shape index: {}]   ;;  %s4638_s10 = inlined_call_operand.vmem [shape: f32[1,32], index: 10, kind: input, shape index: {}]   ;;  %s4639_s11 = inlined_call_operand.vmem [shape: f32[32,32], index: 11, kind: input, shape index: {}]   ;;  %s4640_s12 = inlined_call_operand.vmem [shape: f32[32,32], index: 12, kind: input, shape index: {}]   ;;  %s4641_s13 = inlined_call_operand.vmem [shape: f32[1,32], index: 13, kind: input, shape index: {}]   ;;  %s4642_s14 = inlined_call_operand.vmem [shape: f32[32,128], index: 14, kind: input, shape index: {}]   ;;  %s4643_s15 = inlined_call_operand.vmem [shape: f32[1,128], index: 15, kind: input, shape index: {}]   ;;  %s4644_s16 = inlined_call_operand.hbm [shape: f32[3,2,128], index: 16, kind: output, shape index: {}]  }
   0x1   :  { %4646 = sst [smem:[#allocation7_spill]] %s4628_s0 }
   0x2   :  { %4647 = sst [smem:[#allocation8_spill]] %s4629_s1 }
   0x3   :  { %4648 = sst [smem:[#allocation9_spill]] %s4630_s2 }
   0x4   :  { %4649 = sst [smem:[#allocation10_spill]] %s4631_s3 }
   0x5   :  { %4650 = sst [smem:[#allocation11_spill]] %s4632_s4 }
   0x6   :  { %21 = vsyncpa [#allocation3], 0 }
   0x7   :  { %23 = vsyncpa [#allocation3 + $0x1], 0  ;;  %s3714_s21 = smov 0   ;;  %s3716_s22 = smov 0  }
   0x8   :  { %s3718_s23 = smov 0   ;;  %s3720_s24 = smov 0  }
   0x9 LB: > { %4651 = sst [smem:[#allocation5_spill]] %s3619_s23  ;;  %s3735_s25 = sadd.s32 4294967295, %s3623_s24   ;;  %s3623_s24 = sphi %s3720_s24, %s4664_s24   ;;  %s3619_s23 = sphi %s3718_s23, %s4661_s23   ;;  %s3615_s22 = sphi %s3716_s22, %s4663_s22   ;;  %s3611_s21 = sphi %s3714_s21, %s4662_s21  }
   0xa   : > { %s2914_s26 = sadd.s32 4294967294, %s3623_s24   ;;  %s3739_s27 = sadd.s32 1, %s3623_s24  }
   0xb   : > { %s377_s28 = sadd.s32 1, %s3619_s23  ;;  %s374_s29 = ssub.s32 %s3623_s24, %s3739_s27 }
   0xc   : > { %p387_p0 = scmp.ne.s32.totalorder %s3619_s23, %s3615_s22  ;;  %p375_p1 = scmp.eq.s32.totalorder %s374_s29, 0 }
   0xd   : > { %p388_p2 = scmp.eq.s32.totalorder %s3735_s25, 2  ;;  %p393_p3 = scmp.ne.s32.totalorder %s3615_s22, %s3611_s21 }
   0xe   : > { %p394_p4 = scmp.eq.s32.totalorder %s2914_s26, 2  ;;  %p2917_p7 = scmp.ge.s32.totalorder %s3623_s24, 1 }
   0xf   : > { %s3750_s30 = scalar_select %p375_p1, %s3619_s23, %s377_s28  }
  0x10   : > { %p3752_p5 = por %p388_p2, %p387_p0  ;;  %p3756_p6 = por %p394_p4, %p393_p3 }
  0x11   : > { %4652 = sst [smem:[#allocation6_spill]] %s3750_s30  ;;  %p467_p8 = scmp.lt.s32.totalorder %s3623_s24, 4 }
  0x13   : > { %p468_p9 = pnand %p2917_p7, %p467_p8 }
  0x14   : > { %s4655_s1 = sld [smem:[#allocation8_spill]] (!%p468_p9)  ;;  %s2919_s20 = sshll.u32 (!%p468_p9), %s3735_s25, 1 }
  0x15   : > { %471 = sbr.rel (%p468_p9) target bundleno = 1524 (0x5f4), region = 84  ;;  %s4656_s3 = sld [smem:[#allocation10_spill]] (!%p468_p9) }
  0x16   : > { %p519_p10 = scmp.lt.s32.totalorder (!%p468_p9), %s2919_s20, 5  ;;  %s4657_s18 = sld [smem:[#allocation7_spill]] (!%p468_p9) }
  0x17   : > { %s4658_s2 = sld [smem:[#allocation9_spill]] (!%p468_p9)  ;;  %s3628_s26 = smov (!%p468_p9), [#allocation2]  }
  0x18   : > { %s4659_s4 = sld [smem:[#allocation11_spill]] (!%p468_p9) }
  0x1a   : > { %v551_v0 = vld [vmem:[%s4655_s1] sm:$0x7]  ;;  %vm638_vm0 = vcmask 1042432   ;;  %s4666_s20 = smov (!%p519_p10, %s2919_s20), 5  ;;  %vm559_vm1 = vcmask 23552   ;;  %vm878_vm2 = vcmask 523264  }
  0x1b   : > { %v870_v1 = vld [vmem:[%s4656_s3 + $0x38] sm:$0xff]  ;;  %3237 = vmatprep.subr.msk.mxu0 %vm638_vm0, %v551_v0  ;;  %3518 = vmatprep.subr.msk.mxu1 %vm638_vm0, %v551_v0  ;;  %s3520_s29 = smul.u32 104, %s4666_s20  ;;  %v869_v10 = vld [vmem:[%s4656_s3 + $0x30] sm:$0xff]  ;;  %v868_v15 = vld [vmem:[%s4656_s3 + $0x28] sm:$0xff]  ;;  %vm3626_vm3 = vmmov 0   ;;  %vm1152_vm4 = vcmask 261120  }
  0x1c   : > { %3238 = vmatpush3.msk.msra.mxu0 %vm638_vm0, %v551_v0  ;;  %3519 = vmatpush3.msk.msra.mxu1 %vm638_vm0, %v551_v0  ;;  %v867_v20 = vld [vmem:[%s4656_s3 + $0x20] sm:$0xff]  ;;  %v866_v25 = vld [vmem:[%s4656_s3 + $0x18] sm:$0xff]  ;;  %v865_v29 = vld [vmem:[%s4656_s3 + $0x10] sm:$0xff]  ;;  %vm1230_vm5 = vcmask 1041409  }
  0x1d   : > { %3278 = vmatprep.subr.mxu1 %v870_v1  ;;  %s3772_s19 = scalar_lea.vmem %s4657_s18, %s3520_s29  ;;  %v864_v33 = vld [vmem:[%s4656_s3 + $0x8] sm:$0xff]  ;;  %v863_v34 = vld [vmem:[%s4656_s3] sm:$0xff]  ;;  %s3063_s29 = sshll.u32 %s3735_s25, 5 }
  0x1e   : > { %v525_v2 = vld [vmem:[%s3772_s19] sm:$0xff]  ;;  %v526_v3 = vld [vmem:[%s3772_s19 + $0x8] sm:$0xff]  ;;  %v527_v4 = vld [vmem:[%s3772_s19 + $0x10] sm:$0xff]  ;;  %s3567_s25 = sshll.u32 %s3628_s26, 4  ;;  %s3568_s25 = int_to_ptr.vmem [resolvable:$false] %s3567_s25 }
  0x1f   : > { %3239 = vmatprep.mubr.msk.f32.mxu0 %vm559_vm1, %v525_v2  ;;  %v528_v5 = vld [vmem:[%s3772_s19 + $0x18] sm:$0xff]  ;;  %v529_v6 = vld [vmem:[%s3772_s19 + $0x20] sm:$0xff]  ;;  %v538_v8 = vld [vmem:[%s3772_s19 + $0x68] sm:$0xff] }
  0x20   : > { %3240 = vmatmul.mubr.msk.f32.vlgmr.msra.gmra.mxu0 %vm559_vm1, %v526_v3  ;;  %v537_v7 = vld [vmem:[%s3772_s19 + $0x60] sm:$0xff]  ;;  %v539_v9 = vld [vmem:[%s3772_s19 + $0x70] sm:$0xff]  ;;  %v530_v11 = vld [vmem:[%s3772_s19 + $0x28] sm:$0xff] }
  0x21   : > { %3242 = vmatprep.mubr.msk.f32.mxu0 %vm559_vm1, %v527_v4  ;;  %3257 = vmatprep.mubr.msk.f32.mxu1 %vm559_vm1, %v537_v7  ;;  %v540_v12 = vld [vmem:[%s3772_s19 + $0x78] sm:$0xff]  ;;  %v531_v13 = vld [vmem:[%s3772_s19 + $0x30] sm:$0xff]  ;;  %v541_v14 = vld [vmem:[%s3772_s19 + $0x80] sm:$0xff] }
  0x22   : > { %3258 = vmatmul.mubr.msk.f32.vlgmr.msra.gmra.mxu1 %vm559_vm1, %v538_v8  ;;  %v532_v16 = vld [vmem:[%s3772_s19 + $0x38] sm:$0xff]  ;;  %v542_v17 = vld [vmem:[%s3772_s19 + $0x88] sm:$0xff]  ;;  %v533_v18 = vld [vmem:[%s3772_s19 + $0x40] sm:$0xff] }
  0x23   : > { %3260 = vmatprep.mubr.msk.f32.mxu1 %vm559_vm1, %v539_v9  ;;  %3279 = vmatpush3.msra.mxu1 %v870_v1  ;;  %v543_v19 = vld [vmem:[%s3772_s19 + $0x90] sm:$0xff]  ;;  %v534_v21 = vld [vmem:[%s3772_s19 + $0x48] sm:$0xff]  ;;  %v544_v22 = vld [vmem:[%s3772_s19 + $0x98] sm:$0xff] }
  0x24   : > { %3243 = vmatmul.mubr.msk.f32.gmra.mxu0 %vm559_vm1, %v528_v5  ;;  %3280 = vmatprep.subr.mxu1 %v869_v10  ;;  %v535_v23 = vld [vmem:[%s3772_s19 + $0x50] sm:$0xff]  ;;  %v545_v24 = vld [vmem:[%s3772_s19 + $0xa0] sm:$0xff]  ;;  %v536_v26 = vld [vmem:[%s3772_s19 + $0x58] sm:$0xff] }
  0x25   : > { %3245 = vmatprep.mubr.msk.f32.mxu0 %vm559_vm1, %v529_v6  ;;  %3281 = vmatpush3.msra.mxu1 %v869_v10  ;;  %v546_v27 = vld [vmem:[%s3772_s19 + $0xa8] sm:$0xff]  ;;  %v547_v28 = vld [vmem:[%s3772_s19 + $0xb0] sm:$0xff]  ;;  %v548_v30 = vld [vmem:[%s3772_s19 + $0xb8] sm:$0xff] }
  0x26   : > { %3261 = vmatmul.mubr.msk.f32.gmra.mxu1 %vm559_vm1, %v540_v12  ;;  %3282 = vmatprep.subr.mxu1 %v868_v15  ;;  %v549_v31 = vld [vmem:[%s3772_s19 + $0xc0] sm:$0xff]  ;;  %v550_v32 = vld [vmem:[%s3772_s19 + $0xc8] sm:$0xff]  ;;  %s515_s19 = sand.u32 1, %s3615_s22  }
  0x27   : > { %3263 = vmatprep.mubr.msk.f32.mxu1 %vm559_vm1, %v541_v14  ;;  %3283 = vmatpush3.msra.mxu1 %v868_v15  ;;  %v3850_v35 = vld [vmem:[%s4658_s2] ss:$0 sm:$0xff]  ;;  %s2918_s20 = sshll.u32 %s515_s19, 1  ;;  %s4593_s2 = scalar_lea.hbm %s4644_s16, %s3063_s29 }
  0x28   : > { %3246 = vmatmul.mubr.msk.f32.gmra.mxu0 %vm559_vm1, %v530_v11  ;;  %3284 = vmatprep.subr.mxu1 %v867_v20  ;;  %s517_s18 = scalar_lea.vmem [#allocation2], %s2918_s20  ;;  %s2842_s3 = scalar_lea.sflag [#allocation3], %s515_s19 }
  0x29   : > { %3248 = vmatprep.mubr.msk.f32.mxu0 %vm559_vm1, %v531_v13  ;;  %3285 = vmatpush3.msra.mxu1 %v867_v20  ;;  %s2855_s23 = sshll.u32 %s517_s18, 4  ;;  %s3569_s20 = scalar_lea.vmem %s3568_s25, 64  ;;  %s2856_s23 = int_to_ptr.vmem [resolvable:$true] %s2855_s23 }
  0x2a   : > { %3264 = vmatmul.mubr.msk.f32.gmra.mxu1 %vm559_vm1, %v542_v17  ;;  %3286 = vmatprep.subr.mxu1 %v866_v25  ;;  %p3570_p0 = scmp.lt.s32.totalorder %s2856_s23, %s3568_s25 }
  0x2b   : > { %3266 = vmatprep.mubr.msk.f32.mxu1 %vm559_vm1, %v543_v19  ;;  %3287 = vmatpush3.msra.mxu1 %v866_v25 }
  0x2c   : > { %3249 = vmatmul.mubr.msk.f32.gmra.mxu0 %vm559_vm1, %v532_v16  ;;  %3288 = vmatprep.subr.mxu1 %v865_v29 }
  0x2d   : > { %3251 = vmatprep.mubr.msk.f32.mxu0 %vm559_vm1, %v533_v18  ;;  %3289 = vmatpush3.msra.mxu1 %v865_v29 }
  0x2e   : > { %3267 = vmatmul.mubr.msk.f32.gmra.mxu1 %vm559_vm1, %v544_v22  ;;  %3290 = vmatprep.subr.mxu1 %v864_v33 }
  0x2f   : > { %3269 = vmatprep.mubr.msk.f32.mxu1 %vm559_vm1, %v545_v24  ;;  %3291 = vmatpush3.msra.mxu1 %v864_v33 }
  0x30   : > { %3252 = vmatmul.mubr.msk.f32.gmra.mxu0 %vm559_vm1, %v534_v21  ;;  %3292 = vmatprep.subr.mxu1 %v863_v34 }
  0x31   : > { %3254 = vmatprep.mubr.msk.f32.mxu0 %vm559_vm1, %v535_v23  ;;  %3293 = vmatpush3.msra.mxu1 %v863_v34 }
  0x32   : > { %3270 = vmatmul.mubr.msk.f32.gmra.mxu1 %vm559_vm1, %v546_v27 }
  0x33   : > { %3272 = vmatprep.mubr.msk.f32.mxu1 %vm559_vm1, %v547_v28 }
  0x34   : > { %3255 = vmatmul.mubr.msk.f32.gmra.mxu0 %vm559_vm1, %v536_v26 }
  0x36   : > { %3273 = vmatmul.mubr.msk.f32.gmra.mxu1 %vm559_vm1, %v548_v30 }
  0x37   : > { %3275 = vmatprep.mubr.msk.f32.mxu1 %vm559_vm1, %v549_v31 }
  0x3a   : > { %3276 = vmatmul.mubr.msk.f32.gmra.mxu1 %vm559_vm1, %v550_v32 }
  0xe0   : > { %v3241_v36 = vpop.f32.mrf.mxu0 }
  0xe1   : > { %v714_v37 = vadd.f32 %v3241_v36, %v3850_v35 }
  0xe2   : > { %v708_v38 = vpop.f32.mrf.mxu0  ;;  %v3259_v41 = vpop.f32.mrf.mxu1 }
  0xe3   : > { %v709_v39 = vadd.f32 %v3850_v35, %v708_v38  ;;  %v838_v43 = vmax.f32 %v714_v37, 0.0  ;;  %v774_v20 = vadd.f32 %v3259_v41, %v3850_v35 }
  0xe4   : > { %v3244_v40 = vpop.f32.mrf.mxu0  ;;  %v768_v46 = vpop.f32.mrf.mxu1 }
  0xe5   : > { %v837_v42 = vmax.f32 %v709_v39, 0.0  ;;  %v724_v44 = vadd.f32 %v3244_v40, %v3850_v35  ;;  %v769_v10 = vadd.f32 %v3850_v35, %v768_v46  ;;  %v850_v24 = vmax.f32 %v774_v20, 0.0 }
  0xe6   : > { %v718_v45 = vpop.f32.mrf.mxu0  ;;  %v3262_v49 = vpop.f32.mrf.mxu1 }
  0xe7   : > { %v719_v47 = vadd.f32 %v3850_v35, %v718_v45  ;;  %3294 = vmatprep.mubr.msk.f32.mxu1 %vm878_vm2, %v837_v42  ;;  %v840_v51 = vmax.f32 %v724_v44, 0.0  ;;  %v849_v17 = vmax.f32 %v769_v10, 0.0  ;;  %v784_v25 = vadd.f32 %v3262_v49, %v3850_v35 }
  0xe8   : > { %v3247_v48 = vpop.f32.mrf.mxu0  ;;  %3295 = vmatmul.mubr.msk.f32.vlgmr.msra.gmra.mxu1 %vm878_vm2, %v838_v43  ;;  %v778_v54 = vpop.f32.mrf.mxu1 }
  0xe9   : > { %v839_v50 = vmax.f32 %v719_v47, 0.0  ;;  %v734_v52 = vadd.f32 %v3247_v48, %v3850_v35  ;;  %v779_v18 = vadd.f32 %v3850_v35, %v778_v54  ;;  %v852_v29 = vmax.f32 %v784_v25, 0.0  ;;  %v1217_v54 = vld [vmem:[%s4634_s6] sm:$0xff] }
  0xea   : > { %v728_v53 = vpop.f32.mrf.mxu0  ;;  %v3265_v57 = vpop.f32.mrf.mxu1 }
  0xeb   : > { %v729_v55 = vadd.f32 %v3850_v35, %v728_v53  ;;  %3297 = vmatprep.mubr.msk.f32.mxu1 %vm878_vm2, %v839_v50  ;;  %v842_v59 = vmax.f32 %v734_v52, 0.0  ;;  %v851_v22 = vmax.f32 %v779_v18, 0.0  ;;  %v794_v30 = vadd.f32 %v3265_v57, %v3850_v35  ;;  %v1218_v53 = vld [vmem:[%s4634_s6 + $0x8] sm:$0xff] }
  0xec   : > { %v3250_v56 = vpop.f32.mrf.mxu0  ;;  %3298 = vmatmul.mubr.msk.f32.gmra.mxu1 %vm878_vm2, %v840_v51  ;;  %v788_v62 = vpop.f32.mrf.mxu1  ;;  %v1220_v51 = vld [vmem:[%s4634_s6 + $0x18] sm:$0xff]  ;;  %v3625_v52 = vmov 0.0  }
  0xed   : > { %v841_v58 = vmax.f32 %v729_v55, 0.0  ;;  %v744_v60 = vadd.f32 %v3250_v56, %v3850_v35  ;;  %v789_v23 = vadd.f32 %v3850_v35, %v788_v62  ;;  %v854_v34 = vmax.f32 %v794_v30, 0.0  ;;  %3333 = vmatprep.subr.mxu0 %v3625_v52  ;;  %3391 = vmatprep.subr.mxu1 %v3625_v52  ;;  %v3924_v55 = vld [vmem:[%s4633_s5 + $0x18] sm:$0xff] }
  0xee   : > { %v738_v61 = vpop.f32.mrf.mxu0  ;;  %v3268_v1 = vpop.f32.mrf.mxu1  ;;  %3334 = vmatpush3.msra.mxu0 %v1220_v51  ;;  %3341 = vmatprep.mubr.msk.f32.mxu0 %vm3626_vm3, %v3625_v52 }
  0xef   : > { %v739_v63 = vadd.f32 %v3850_v35, %v738_v61  ;;  %3300 = vmatprep.mubr.msk.f32.mxu1 %vm878_vm2, %v841_v58  ;;  %v844_v3 = vmax.f32 %v744_v60, 0.0  ;;  %v853_v27 = vmax.f32 %v789_v23, 0.0  ;;  %v804_v36 = vadd.f32 %v3268_v1, %v3850_v35  ;;  %3335 = vmatprep.subr.mxu0 %v3625_v52 }
  0xf0   : > { %v3253_v0 = vpop.f32.mrf.mxu0  ;;  %3301 = vmatmul.mubr.msk.f32.gmra.mxu1 %vm878_vm2, %v842_v59  ;;  %v798_v6 = vpop.f32.mrf.mxu1 }
  0xf1   : > { %v843_v2 = vmax.f32 %v739_v63, 0.0  ;;  %v754_v4 = vadd.f32 %v3253_v0, %v3850_v35  ;;  %v799_v28 = vadd.f32 %v3850_v35, %v798_v6  ;;  %v856_v40 = vmax.f32 %v804_v36, 0.0 }
  0xf2   : > { %v748_v5 = vpop.f32.mrf.mxu0  ;;  %v3271_v14 = vpop.f32.mrf.mxu1 }
  0xf3   : > { %v749_v7 = vadd.f32 %v3850_v35, %v748_v5  ;;  %3303 = vmatprep.mubr.msk.f32.mxu1 %vm878_vm2, %v843_v2  ;;  %v846_v11 = vmax.f32 %v754_v4, 0.0  ;;  %v855_v32 = vmax.f32 %v799_v28, 0.0  ;;  %v814_v41 = vadd.f32 %v3271_v14, %v3850_v35  ;;  %v3934_v2 = vld [vmem:[%s4659_s4] ss:$0 sm:$0xff]  ;;  %s3563_s4 = scalar_lea.vmem %s2856_s23, 32 }
  0xf4   : > { %v3256_v8 = vpop.f32.mrf.mxu0  ;;  %3304 = vmatmul.mubr.msk.f32.gmra.mxu1 %vm878_vm2, %v844_v3  ;;  %v808_v21 = vpop.f32.mrf.mxu1  ;;  %p3564_p11 = scmp.ne.s32.totalorder %s2856_s23, %s3563_s4  ;;  %p3571_p1 = scmp.lt.s32.totalorder %s3569_s20, %s3563_s4 }
  0xf5   : > { %v845_v9 = vmax.f32 %v749_v7, 0.0  ;;  %v764_v12 = vadd.f32 %v3256_v8, %v3850_v35  ;;  %v809_v33 = vadd.f32 %v3850_v35, %v808_v21  ;;  %v858_v45 = vmax.f32 %v814_v41, 0.0 }
  0xf6   : > { %v758_v13 = vpop.f32.mrf.mxu0  ;;  %v3274_v26 = vpop.f32.mrf.mxu1  ;;  %p3565_p12 = pnand %p3564_p11, %p3752_p5  ;;  %p3572_p2 = por %p3571_p1, %p3570_p0 }
  0xf7   : > { %v759_v15 = vadd.f32 %v3850_v35, %v758_v13  ;;  %3306 = vmatprep.mubr.msk.f32.mxu1 %vm878_vm2, %v845_v9  ;;  %v848_v19 = vmax.f32 %v764_v12, 0.0  ;;  %v857_v38 = vmax.f32 %v809_v33, 0.0  ;;  %v824_v46 = vadd.f32 %v3274_v26, %v3850_v35 }
  0xf8   : > { %3307 = vmatmul.mubr.msk.f32.gmra.mxu1 %vm878_vm2, %v846_v11  ;;  %v818_v31 = vpop.f32.mrf.mxu1  ;;  %p3566_p13 = pneg %p3565_p12 }
  0xf9   : > { %v847_v16 = vmax.f32 %v759_v15, 0.0  ;;  %v819_v39 = vadd.f32 %v3850_v35, %v818_v31  ;;  %v860_v48 = vmax.f32 %v824_v46, 0.0 }
  0xfa   : > { %v3277_v37 = vpop.f32.mrf.mxu1  ;;  %p3573_p3 = pnand %p3572_p2, %p3566_p13 }
  0xfb   : > { %3309 = vmatprep.mubr.msk.f32.mxu1 %vm878_vm2, %v847_v16  ;;  %v859_v43 = vmax.f32 %v819_v39, 0.0  ;;  %v834_v49 = vadd.f32 %v3277_v37, %v3850_v35 }
  0xfc   : > { %3310 = vmatmul.mubr.msk.f32.gmra.mxu1 %vm878_vm2, %v848_v19  ;;  %v828_v42 = vpop.f32.mrf.mxu1 }
  0xfd   : > { %3312 = vmatprep.mubr.msk.f32.mxu1 %vm878_vm2, %v849_v17  ;;  %v829_v44 = vadd.f32 %v3850_v35, %v828_v42  ;;  %v862_v50 = vmax.f32 %v834_v49, 0.0  ;;  %v1219_v35 = vld [vmem:[%s4634_s6 + $0x10] sm:$0xff] }
  0xfe   : > { %3336 = vmatpush3.msra.mxu0 %v1219_v35 }
  0xff   : > { %v861_v47 = vmax.f32 %v829_v44, 0.0  ;;  %3337 = vmatprep.subr.mxu0 %v3625_v52 }
 0x100   : > { %3313 = vmatmul.mubr.msk.f32.gmra.mxu1 %vm878_vm2, %v850_v24  ;;  %3338 = vmatpush3.msra.mxu0 %v1218_v53 }
 0x101   : > { %3315 = vmatprep.mubr.msk.f32.mxu1 %vm878_vm2, %v851_v22  ;;  %3339 = vmatprep.subr.mxu0 %v3625_v52 }
 0x102   : > { %3340 = vmatpush3.msra.mxu0 %v1217_v54 }
 0x103   : > { %3344 = vmatprep.subr.mxu0 %v3924_v55 }
 0x104   : > { %3316 = vmatmul.mubr.msk.f32.gmra.mxu1 %vm878_vm2, %v852_v29 }
 0x105   : > { %3318 = vmatprep.mubr.msk.f32.mxu1 %vm878_vm2, %v853_v27 }
 0x108   : > { %3319 = vmatmul.mubr.msk.f32.gmra.mxu1 %vm878_vm2, %v854_v34 }
 0x109   : > { %3321 = vmatprep.mubr.msk.f32.mxu1 %vm878_vm2, %v855_v32 }
 0x10c   : > { %3322 = vmatmul.mubr.msk.f32.gmra.mxu1 %vm878_vm2, %v856_v40 }
 0x10d   : > { %3324 = vmatprep.mubr.msk.f32.mxu1 %vm878_vm2, %v857_v38 }
 0x110   : > { %3325 = vmatmul.mubr.msk.f32.gmra.mxu1 %vm878_vm2, %v858_v45 }
 0x111   : > { %3327 = vmatprep.mubr.msk.f32.mxu1 %vm878_vm2, %v859_v43 }
 0x114   : > { %3328 = vmatmul.mubr.msk.f32.gmra.mxu1 %vm878_vm2, %v860_v48 }
 0x115   : > { %3330 = vmatprep.mubr.msk.f32.mxu1 %vm878_vm2, %v861_v47 }
 0x118   : > { %3331 = vmatmul.mubr.msk.f32.gmra.mxu1 %vm878_vm2, %v862_v50 }
 0x119   : > { %3399 = vmatprep.mubr.msk.f32.mxu1 %vm3626_vm3, %v3625_v52 }
 0x1a8   : > { %v3296_v56 = vpop.f32.mrf.mxu1 }
 0x1a9   : > { %v3954_v12 = vadd.f32 %v3296_v56, %v3934_v2 }
 0x1aa   : > { %v1023_v57 = vpop.f32.mrf.mxu1 }
 0x1ab   : > { %v3940_v6 = vadd.f32 %v3934_v2, %v1023_v57  ;;  %v1154_v24 = vsel %vm1152_vm4, %v3954_v12, -inf }
 0x1ac   : > { %v3299_v58 = vpop.f32.mrf.mxu1 }
 0x1ad   : > { %v3946_v9 = vadd.f32 %v3299_v58, %v3934_v2  ;;  %v1153_v14 = vsel %vm1152_vm4, %v3940_v6, -inf }
 0x1ae   : > { %v1033_v59 = vpop.f32.mrf.mxu1 }
 0x1af   : > { %v3937_v4 = vadd.f32 %v3934_v2, %v1033_v59  ;;  %v1157_v20 = vsel %vm1152_vm4, %v3946_v9, -inf }
 0x1b0   : > { %v3302_v60 = vpop.f32.mrf.mxu1  ;;  %v1158_v31 = vmax.f32 %v1154_v24, %v1157_v20 }
 0x1b1   : > { %v1155_v10 = vsel %vm1152_vm4, %v3937_v4, -inf  ;;  %v3959_v15 = vadd.f32 %v3302_v60, %v3934_v2 }
 0x1b2   : > { %v1043_v61 = vpop.f32.mrf.mxu1  ;;  %v1156_v18 = vmax.f32 %v1153_v14, %v1155_v10 }
 0x1b3   : > { %v3943_v7 = vadd.f32 %v3934_v2, %v1043_v61  ;;  %v1161_v27 = vsel %vm1152_vm4, %v3959_v15, -inf }
 0x1b4   : > { %v3305_v62 = vpop.f32.mrf.mxu1  ;;  %v1162_v38 = vmax.f32 %v1158_v31, %v1161_v27 }
 0x1b5   : > { %v1159_v16 = vsel %vm1152_vm4, %v3943_v7, -inf  ;;  %v3969_v21 = vadd.f32 %v3305_v62, %v3934_v2 }
 0x1b6   : > { %v1053_v63 = vpop.f32.mrf.mxu1  ;;  %v1160_v25 = vmax.f32 %v1156_v18, %v1159_v16 }
 0x1b7   : > { %v3951_v11 = vadd.f32 %v3934_v2, %v1053_v63  ;;  %v1165_v34 = vsel %vm1152_vm4, %v3969_v21, -inf }
 0x1b8   : > { %v3308_v0 = vpop.f32.mrf.mxu1  ;;  %v1166_v43 = vmax.f32 %v1162_v38, %v1165_v34 }
 0x1b9   : > { %v1163_v22 = vsel %vm1152_vm4, %v3951_v11, -inf  ;;  %v3981_v28 = vadd.f32 %v3308_v0, %v3934_v2 }
 0x1ba   : > { %v1063_v1 = vpop.f32.mrf.mxu1  ;;  %v1164_v32 = vmax.f32 %v1160_v25, %v1163_v22 }
 0x1bb   : > { %v3964_v17 = vadd.f32 %v3934_v2, %v1063_v1  ;;  %v1169_v41 = vsel %vm1152_vm4, %v3981_v28, -inf }
 0x1bc   : > { %v3311_v3 = vpop.f32.mrf.mxu1  ;;  %v1170_v48 = vmax.f32 %v1166_v43, %v1169_v41 }
 0x1bd   : > { %v1167_v29 = vsel %vm1152_vm4, %v3964_v17, -inf  ;;  %v3991_v36 = vadd.f32 %v3311_v3, %v3934_v2 }
 0x1be   : > { %v1073_v5 = vpop.f32.mrf.mxu1  ;;  %v1168_v39 = vmax.f32 %v1164_v32, %v1167_v29 }
 0x1bf   : > { %v3974_v23 = vadd.f32 %v3934_v2, %v1073_v5  ;;  %v1173_v46 = vsel %vm1152_vm4, %v3991_v36, -inf }
 0x1c0   : > { %v3314_v8 = vpop.f32.mrf.mxu1  ;;  %v1174_v54 = vmax.f32 %v1170_v48, %v1173_v46 }
 0x1c1   : > { %v1171_v37 = vsel %vm1152_vm4, %v3974_v23, -inf  ;;  %v4005_v49 = vadd.f32 %v3314_v8, %v3934_v2 }
 0x1c2   : > { %v1083_v13 = vpop.f32.mrf.mxu1  ;;  %v1172_v44 = vmax.f32 %v1168_v39, %v1171_v37 }
 0x1c3   : > { %v3986_v30 = vadd.f32 %v3934_v2, %v1083_v13  ;;  %v1184_v61 = vsel %vm1152_vm4, %v4005_v49, -inf }
 0x1c4   : > { %v3317_v19 = vpop.f32.mrf.mxu1 }
 0x1c5   : > { %v1175_v42 = vsel %vm1152_vm4, %v3986_v30, -inf  ;;  %v4002_v47 = vadd.f32 %v3317_v19, %v3934_v2 }
 0x1c6   : > { %v1093_v26 = vpop.f32.mrf.mxu1  ;;  %v1176_v50 = vmax.f32 %v1172_v44, %v1175_v42 }
 0x1c7   : > { %v1186_v57 = vsel %vm1152_vm4, %v4002_v47, -inf  ;;  %v4016_v58 = vadd.f32 %v3934_v2, %v1093_v26 }
 0x1c8   : > { %v3320_v33 = vpop.f32.mrf.mxu1  ;;  %v1177_v62 = vmax.f32 %v1176_v50, %v1174_v54  ;;  %v1187_v8 = vmax.f32 %v1184_v61, %v1186_v57 }
 0x1c9   : > { %v4008_v35 = vadd.f32 %v3320_v33, %v3934_v2  ;;  %v1185_v13 = vsel %vm1152_vm4, %v4016_v58, -inf }
 0x1ca   : > { %v1103_v40 = vpop.f32.mrf.mxu1  ;;  %v1178_v19 = vrot.slane %v1177_v62, 4 }
 0x1cb   : > { %v4011_v53 = vadd.f32 %v3934_v2, %v1103_v40  ;;  %v1190_v0 = vsel %vm1152_vm4, %v4008_v35, -inf }
 0x1cc   : > { %v3323_v45 = vpop.f32.mrf.mxu1  ;;  %v1191_v20 = vmax.f32 %v1187_v8, %v1190_v0  ;;  %v1179_v38 = vmax.f32 %v1177_v62, %v1178_v19  ;;  %v1332_v19 = vld [vmem:[%s4633_s5 + $0x10] sm:$0xff] }
 0x1cd   : > { %v4019_v59 = vadd.f32 %v3323_v45, %v3934_v2  ;;  %v1188_v1 = vsel %vm1152_vm4, %v4011_v53, -inf }
 0x1ce   : > { %v1113_v51 = vpop.f32.mrf.mxu1  ;;  %v1189_v22 = vmax.f32 %v1185_v13, %v1188_v1  ;;  %v1180_v48 = vrot.slane %v1179_v38, 2 }
 0x1cf   : > { %v4022_v60 = vadd.f32 %v3934_v2, %v1113_v51  ;;  %v1194_v14 = vsel %vm1152_vm4, %v4019_v59, -inf }
 0x1d0   : > { %v3326_v56 = vpop.f32.mrf.mxu1  ;;  %v1195_v29 = vmax.f32 %v1191_v20, %v1194_v14  ;;  %v1304_v14 = vmax.f32 %v3940_v6, 0.0  ;;  %v1331_v20 = vld [vmem:[%s4633_s5 + $0x8] sm:$0xff]  ;;  %v1330_v6 = vld [vmem:[%s4633_s5] sm:$0xff] }
 0x1d1   : > { %v4031_v3 = vadd.f32 %v3326_v56, %v3934_v2  ;;  %v1192_v16 = vsel %vm1152_vm4, %v4022_v60, -inf  ;;  %v1181_v56 = vmax.f32 %v1179_v38, %v1180_v48  ;;  %v1611_v38 = vlaneseq }
 0x1d2   : > { %v1123_v63 = vpop.f32.mrf.mxu1  ;;  %v1193_v31 = vmax.f32 %v1189_v22, %v1192_v16  ;;  %v1305_v22 = vmax.f32 %v3954_v12, 0.0  ;;  %v1309_v12 = vmax.f32 %v3959_v15, 0.0  ;;  %v1316_v15 = vmax.f32 %v3986_v30, 0.0 }
 0x1d3   : > { %v4034_v5 = vadd.f32 %v3934_v2, %v1123_v63  ;;  %v1198_v25 = vsel %vm1152_vm4, %v4031_v3, -inf  ;;  %v1182_v62 = vrot.slane %v1181_v56, 1  ;;  %v1321_v30 = vmax.f32 %v4008_v35, 0.0 }
 0x1d4   : > { %v3329_v10 = vpop.f32.mrf.mxu1  ;;  %v1199_v39 = vmax.f32 %v1195_v29, %v1198_v25  ;;  %v1308_v25 = vmax.f32 %v3943_v7, 0.0  ;;  %v1312_v29 = vmax.f32 %v3964_v17, 0.0  ;;  %v1313_v7 = vmax.f32 %v3981_v28, 0.0 }
 0x1d5   : > { %v4043_v18 = vadd.f32 %v3329_v10, %v3934_v2  ;;  %v1196_v26 = vsel %vm1152_vm4, %v4034_v5, -inf  ;;  %v1183_v1 = vmax.f32 %v1181_v56, %v1182_v62  ;;  %v1317_v17 = vmax.f32 %v4005_v49, 0.0 }
 0x1d6   : > { %v1133_v24 = vpop.f32.mrf.mxu1  ;;  %v1197_v40 = vmax.f32 %v1193_v31, %v1196_v26  ;;  %v1310_v26 = vmax.f32 %v3951_v11, 0.0  ;;  %v1315_v11 = vmax.f32 %v3991_v36, 0.0  ;;  %v1320_v28 = vmax.f32 %v4011_v53, 0.0  ;;  %v4151_v31 = vld [vmem:[%s4636_s8 + $0x18] sm:$0xff] }
 0x1d7   : > { %v4050_v27 = vadd.f32 %v3934_v2, %v1133_v24  ;;  %v1202_v33 = vsel %vm1152_vm4, %v4043_v18, -inf  ;;  %v1306_v24 = vmax.f32 %v3937_v4, 0.0  ;;  %v1311_v4 = vmax.f32 %v3969_v21, 0.0 }
 0x1d8   : > { %v3332_v32 = vpop.f32.mrf.mxu1  ;;  %v1203_v44 = vmax.f32 %v1199_v39, %v1202_v33  ;;  %v1318_v21 = vmax.f32 %v4016_v58, 0.0  ;;  %v1322_v36 = vmax.f32 %v4022_v60, 0.0  ;;  %v1323_v49 = vmax.f32 %v4019_v59, 0.0 }
 0x1d9   : > { %v1200_v34 = vsel %vm1152_vm4, %v4050_v27, -inf  ;;  %v4057_v37 = vadd.f32 %v3332_v32, %v3934_v2  ;;  %v1324_v58 = vmax.f32 %v4034_v5, 0.0  ;;  %v1326_v53 = vmax.f32 %v4050_v27, 0.0  ;;  %v1732_v5 = vld [vmem:[%s4637_s9 + $0x10] sm:$0xff]  ;;  %v1730_v27 = vld [vmem:[%s4637_s9] sm:$0xff] }
 0x1da   : > { %v1143_v41 = vpop.f32.mrf.mxu1  ;;  %v1201_v45 = vmax.f32 %v1197_v40, %v1200_v34  ;;  %v1327_v35 = vmax.f32 %v4043_v18, 0.0  ;;  %v1731_v18 = vld [vmem:[%s4637_s9 + $0x8] sm:$0xff]  ;;  %v3627_v34 = vmov 1966171168  }
 0x1db   : > { %v1206_v42 = vsel %vm1152_vm4, %v4057_v37, -inf  ;;  %v4062_v43 = vadd.f32 %v3934_v2, %v1143_v41  ;;  %v1215_v2 = vmax.f32 %v1183_v1, 0.0  ;;  %v1329_v59 = vmax.f32 %v4057_v37, 0.0 }
 0x1dc   : > { %v1207_v50 = vmax.f32 %v1203_v44, %v1206_v42  ;;  %v1609_v37 = vunpack.c.l.s4 %v3627_v34  ;;  %v1612_v42 = vshrl.u32 %v1611_v38, 7 }
 0x1dd   : > { %v1204_v46 = vsel %vm1152_vm4, %v4062_v43, -inf  ;;  %v1328_v60 = vmax.f32 %v4062_v43, 0.0  ;;  %v2976_v43 = vld [vmem:[%s4635_s7] ss:$0 sm:$0xff] }
 0x1de   : > { %v1205_v51 = vmax.f32 %v1201_v45, %v1204_v46  ;;  %v1610_v41 = vunpack.c.0.s8 %v1609_v37  ;;  %v4161_v62 = vsub.s32 0, %v1612_v42 }
 0x1e0   : > { %v1208_v54 = vmax.f32 %v1207_v50, %v1205_v51  ;;  %v4157_v48 = vsub.s32 %v1610_v41, %v1612_v42 }
 0x1e2   : > { %v1209_v57 = vrot.slane %v1208_v54, 4 }
 0x1e4   : > { %v1210_v61 = vmax.f32 %v1208_v54, %v1209_v57 }
 0x1e6   : > { %v1211_v63 = vrot.slane %v1210_v61, 2 }
 0x1e8   : > { %v1212_v0 = vmax.f32 %v1210_v61, %v1211_v63 }
 0x1ea   : > { %v1213_v8 = vrot.slane %v1212_v0, 1 }
 0x1ec   : > { %v1214_v10 = vmax.f32 %v1212_v0, %v1213_v8 }
 0x1ee   : > { %v1216_v13 = vmax.f32 %v1214_v10, 0.0 }
 0x1f0   : > { %v1231_v16 = vsel %vm1230_vm5, %v1216_v13, %v1215_v2 }
 0x1f1   : > { %3342 = vmatmul.mubr.msk.f32.vlgmr.msra.gmra.mxu0 %vm1152_vm4, %v1231_v16 }
 0x1f2   : > { %3345 = vmatpush3.msra.mxu0 %v3924_v55  ;;  %3352 = vmatprep.mubr.msk.f32.mxu0 %vm1152_vm4, %v1304_v14  ;;  %v1307_v55 = vmax.f32 %v3946_v9, 0.0  ;;  %v1314_v9 = vmax.f32 %v3974_v23, 0.0  ;;  %v1319_v23 = vmax.f32 %v4002_v47, 0.0  ;;  %v1325_v47 = vmax.f32 %v4031_v3, 0.0  ;;  %v1733_v3 = vld [vmem:[%s4637_s9 + $0x18] sm:$0xff] }
 0x1f3   : > { %3346 = vmatprep.subr.mxu0 %v1332_v19  ;;  %3392 = vmatpush3.msra.mxu1 %v1733_v3 }
 0x1f4   : > { %3347 = vmatpush3.msra.mxu0 %v1332_v19  ;;  %3393 = vmatprep.subr.mxu1 %v3625_v52 }
 0x1f5   : > { %3348 = vmatprep.subr.mxu0 %v1331_v20  ;;  %3394 = vmatpush3.msra.mxu1 %v1732_v5 }
 0x1f6   : > { %3349 = vmatpush3.msra.mxu0 %v1331_v20  ;;  %3395 = vmatprep.subr.mxu1 %v3625_v52 }
 0x1f7   : > { %3350 = vmatprep.subr.mxu0 %v1330_v6  ;;  %3396 = vmatpush3.msra.mxu1 %v1731_v18 }
 0x1f8   : > { %3351 = vmatpush3.msra.mxu0 %v1330_v6  ;;  %3397 = vmatprep.subr.mxu1 %v3625_v52 }
 0x1f9   : > { %3353 = vmatmul.mubr.msk.f32.vlgmr.msra.gmra.mxu0 %vm1152_vm4, %v1305_v22  ;;  %3449 = vmatprep.subr.mxu0 %v3625_v52 }
 0x1fa   : > { %3355 = vmatprep.mubr.msk.f32.mxu0 %vm1152_vm4, %v1306_v24  ;;  %3398 = vmatpush3.msra.mxu1 %v1730_v27 }
 0x1fb   : > { %3402 = vmatprep.subr.mxu1 %v4151_v31 }
 0x1fd   : > { %3356 = vmatmul.mubr.msk.f32.gmra.mxu0 %vm1152_vm4, %v1307_v55 }
 0x1fe   : > { %3358 = vmatprep.mubr.msk.f32.mxu0 %vm1152_vm4, %v1308_v25 }
 0x201   : > { %3359 = vmatmul.mubr.msk.f32.gmra.mxu0 %vm1152_vm4, %v1309_v12 }
 0x202   : > { %3361 = vmatprep.mubr.msk.f32.mxu0 %vm1152_vm4, %v1310_v26 }
 0x205   : > { %3362 = vmatmul.mubr.msk.f32.gmra.mxu0 %vm1152_vm4, %v1311_v4 }
 0x206   : > { %3364 = vmatprep.mubr.msk.f32.mxu0 %vm1152_vm4, %v1312_v29 }
 0x209   : > { %3365 = vmatmul.mubr.msk.f32.gmra.mxu0 %vm1152_vm4, %v1313_v7 }
 0x20a   : > { %3367 = vmatprep.mubr.msk.f32.mxu0 %vm1152_vm4, %v1314_v9 }
 0x20d   : > { %3368 = vmatmul.mubr.msk.f32.gmra.mxu0 %vm1152_vm4, %v1315_v11 }
 0x20e   : > { %3370 = vmatprep.mubr.msk.f32.mxu0 %vm1152_vm4, %v1316_v15 }
 0x211   : > { %3371 = vmatmul.mubr.msk.f32.gmra.mxu0 %vm1152_vm4, %v1317_v17 }
 0x212   : > { %3373 = vmatprep.mubr.msk.f32.mxu0 %vm1152_vm4, %v1318_v21 }
 0x215   : > { %3374 = vmatmul.mubr.msk.f32.gmra.mxu0 %vm1152_vm4, %v1319_v23 }
 0x216   : > { %3376 = vmatprep.mubr.msk.f32.mxu0 %vm1152_vm4, %v1320_v28 }
 0x219   : > { %3377 = vmatmul.mubr.msk.f32.gmra.mxu0 %vm1152_vm4, %v1321_v30 }
 0x21a   : > { %3379 = vmatprep.mubr.msk.f32.mxu0 %vm1152_vm4, %v1322_v36 }
 0x21d   : > { %3380 = vmatmul.mubr.msk.f32.gmra.mxu0 %vm1152_vm4, %v1323_v49 }
 0x21e   : > { %3382 = vmatprep.mubr.msk.f32.mxu0 %vm1152_vm4, %v1324_v58 }
 0x221   : > { %3383 = vmatmul.mubr.msk.f32.gmra.mxu0 %vm1152_vm4, %v1325_v47 }
 0x222   : > { %3385 = vmatprep.mubr.msk.f32.mxu0 %vm1152_vm4, %v1326_v53 }
 0x225   : > { %3386 = vmatmul.mubr.msk.f32.gmra.mxu0 %vm1152_vm4, %v1327_v35 }
 0x226   : > { %3388 = vmatprep.mubr.msk.f32.mxu0 %vm1152_vm4, %v1328_v60 }
 0x229   : > { %3389 = vmatmul.mubr.msk.f32.gmra.mxu0 %vm1152_vm4, %v1329_v59 }
 0x22a   : > { %3457 = vmatprep.mubr.msk.f32.mxu0 %vm3626_vm3, %v3625_v52 }
 0x2b1   : > { %v1300_v32 = vpop.f32.mrf.mxu0 }
 0x2b2   : > { %v1301_v46 = vadd.f32 %v2976_v43, %v1300_v32 }
 0x2b3   : > { %v3343_v33 = vpop.f32.mrf.mxu0 }
 0x2b4   : > { %v1614_v54 = vrot.slane %v1301_v46, %v4157_v48 }
 0x2b6   : > { %v1622_v61 = vrot.slane %v1614_v54, %v4157_v48  ;;  %v1615_v22 = vcombine.high %v1614_v54, %v1614_v54 }
 0x2b8   : > { %v1633_v1 = vrot.slane %v1622_v61, %v4161_v62  ;;  %v1629_v21 = vrot.slane %v1615_v22, %v4157_v48 }
 0x2b9   : > { %v3354_v39 = vpop.f32.mrf.mxu0 }
 0x2ba   : > { %v4176_v24 = vadd.f32 %v3354_v39, %v1633_v1  ;;  %v1637_v33 = vrot.slane %v1629_v21, %v4161_v62 }
 0x2bb   : > { %v1478_v40 = vpop.f32.mrf.mxu0 }
 0x2bc   : > { %v4166_v13 = vadd.f32 %v1633_v1, %v1478_v40  ;;  %v1667_v23 = vsel %vm1152_vm4, %v4176_v24, -inf }
 0x2bd   : > { %v3357_v44 = vpop.f32.mrf.mxu0 }
 0x2be   : > { %v4170_v19 = vadd.f32 %v3357_v44, %v1633_v1  ;;  %v1666_v25 = vsel %vm1152_vm4, %v4166_v13, -inf }
 0x2bf   : > { %v1488_v45 = vpop.f32.mrf.mxu0 }
 0x2c0   : > { %v4164_v10 = vadd.f32 %v1633_v1, %v1488_v45  ;;  %v1670_v9 = vsel %vm1152_vm4, %v4170_v19, -inf }
 0x2c1   : > { %v3360_v50 = vpop.f32.mrf.mxu0  ;;  %v1671_v53 = vmax.f32 %v1667_v23, %v1670_v9 }
 0x2c2   : > { %v1668_v20 = vsel %vm1152_vm4, %v4164_v10, -inf  ;;  %v4180_v12 = vadd.f32 %v3360_v50, %v1633_v1 }
 0x2c3   : > { %v1498_v51 = vpop.f32.mrf.mxu0  ;;  %v1669_v29 = vmax.f32 %v1666_v25, %v1668_v20 }
 0x2c4   : > { %v4168_v14 = vadd.f32 %v1633_v1, %v1498_v51  ;;  %v1674_v36 = vsel %vm1152_vm4, %v4180_v12, -inf }
 0x2c5   : > { %v3363_v56 = vpop.f32.mrf.mxu0  ;;  %v1675_v18 = vmax.f32 %v1671_v53, %v1674_v36 }
 0x2c6   : > { %v1672_v26 = vsel %vm1152_vm4, %v4168_v14, -inf  ;;  %v4188_v11 = vadd.f32 %v3363_v56, %v1633_v1 }
 0x2c7   : > { %v1508_v57 = vpop.f32.mrf.mxu0  ;;  %v1673_v28 = vmax.f32 %v1669_v29, %v1672_v26 }
 0x2c8   : > { %v4174_v6 = vadd.f32 %v1633_v1, %v1508_v57  ;;  %v1678_v59 = vsel %vm1152_vm4, %v4188_v11, -inf }
 0x2c9   : > { %v3366_v63 = vpop.f32.mrf.mxu0  ;;  %v1679_v38 = vmax.f32 %v1675_v18, %v1678_v59 }
 0x2ca   : > { %v1676_v15 = vsel %vm1152_vm4, %v4174_v6, -inf  ;;  %v4199_v49 = vadd.f32 %v3366_v63, %v1633_v1 }
 0x2cb   : > { %v1518_v0 = vpop.f32.mrf.mxu0  ;;  %v1677_v35 = vmax.f32 %v1673_v28, %v1676_v15 }
 0x2cc   : > { %v4184_v4 = vadd.f32 %v1633_v1, %v1518_v0  ;;  %v1682_v34 = vsel %vm1152_vm4, %v4199_v49, -inf }
 0x2cd   : > { %v3369_v8 = vpop.f32.mrf.mxu0  ;;  %v1683_v43 = vmax.f32 %v1679_v38, %v1682_v34 }
 0x2ce   : > { %v1680_v58 = vsel %vm1152_vm4, %v4184_v4, -inf  ;;  %v4207_v3 = vadd.f32 %v3369_v8, %v1633_v1 }
 0x2cf   : > { %v1528_v2 = vpop.f32.mrf.mxu0  ;;  %v1681_v27 = vmax.f32 %v1677_v35, %v1680_v58 }
 0x2d0   : > { %v4192_v17 = vadd.f32 %v1633_v1, %v1528_v2  ;;  %v1686_v41 = vsel %vm1152_vm4, %v4207_v3, -inf }
 0x2d1   : > { %v3372_v16 = vpop.f32.mrf.mxu0  ;;  %v1687_v54 = vmax.f32 %v1683_v43, %v1686_v41 }
 0x2d2   : > { %v1684_v5 = vsel %vm1152_vm4, %v4192_v17, -inf  ;;  %v4220_v44 = vadd.f32 %v3372_v16, %v1637_v33 }
 0x2d3   : > { %v1538_v55 = vpop.f32.mrf.mxu0  ;;  %v1685_v39 = vmax.f32 %v1681_v27, %v1684_v5 }
 0x2d4   : > { %v4203_v47 = vadd.f32 %v1633_v1, %v1538_v55  ;;  %v1697_v1 = vsel %vm1152_vm4, %v4220_v44, -inf }
 0x2d5   : > { %v3375_v7 = vpop.f32.mrf.mxu0 }
 0x2d6   : > { %v1688_v37 = vsel %vm1152_vm4, %v4203_v47, -inf  ;;  %v4218_v42 = vadd.f32 %v3375_v7, %v1637_v33 }
 0x2d7   : > { %v1548_v30 = vpop.f32.mrf.mxu0  ;;  %v1689_v45 = vmax.f32 %v1685_v39, %v1688_v37 }
 0x2d8   : > { %v1699_v57 = vsel %vm1152_vm4, %v4218_v42, -inf  ;;  %v4228_v61 = vadd.f32 %v1637_v33, %v1548_v30 }
 0x2d9   : > { %v3378_v60 = vpop.f32.mrf.mxu0  ;;  %v1690_v8 = vmax.f32 %v1689_v45, %v1687_v54  ;;  %v1700_v25 = vmax.f32 %v1697_v1, %v1699_v57 }
 0x2da   : > { %v4222_v50 = vadd.f32 %v3378_v60, %v1637_v33  ;;  %v1698_v29 = vsel %vm1152_vm4, %v4228_v61, -inf }
 0x2db   : > { %v1558_v32 = vpop.f32.mrf.mxu0  ;;  %v1691_v21 = vrot.slane %v1690_v8, 4 }
 0x2dc   : > { %v4224_v51 = vadd.f32 %v1637_v33, %v1558_v32  ;;  %v1703_v16 = vsel %vm1152_vm4, %v4222_v50, -inf }
 0x2dd   : > { %v3381_v40 = vpop.f32.mrf.mxu0  ;;  %v1704_v23 = vmax.f32 %v1700_v25, %v1703_v16  ;;  %v1692_v32 = vmax.f32 %v1690_v8, %v1691_v21  ;;  %v1816_v21 = vmax.f32 %v4166_v13, 0.0  ;;  %v1842_v13 = vld [vmem:[%s4636_s8] sm:$0xff] }
 0x2de   : > { %v4230_v63 = vadd.f32 %v3381_v40, %v1637_v33  ;;  %v1701_v20 = vsel %vm1152_vm4, %v4224_v51, -inf }
 0x2df   : > { %v1568_v46 = vpop.f32.mrf.mxu0  ;;  %v1702_v28 = vmax.f32 %v1698_v29, %v1701_v20 }
 0x2e0   : > { %v4232_v0 = vadd.f32 %v1637_v33, %v1568_v46  ;;  %v1707_v7 = vsel %vm1152_vm4, %v4230_v63, -inf  ;;  %v1693_v46 = vrot.slane %v1692_v32, 2 }
 0x2e1   : > { %v3384_v56 = vpop.f32.mrf.mxu0  ;;  %v1708_v35 = vmax.f32 %v1704_v23, %v1707_v7 }
 0x2e2   : > { %v4240_v22 = vadd.f32 %v3384_v56, %v1637_v33  ;;  %v1705_v9 = vsel %vm1152_vm4, %v4232_v0, -inf  ;;  %v1694_v1 = vmax.f32 %v1692_v32, %v1693_v46 }
 0x2e3   : > { %v1578_v2 = vpop.f32.mrf.mxu0  ;;  %v1706_v60 = vmax.f32 %v1702_v28, %v1705_v9  ;;  %v1844_v28 = vld [vmem:[%s4636_s8 + $0x10] sm:$0xff] }
 0x2e4   : > { %v4242_v55 = vadd.f32 %v1637_v33, %v1578_v2  ;;  %v1711_v36 = vsel %vm1152_vm4, %v4240_v22, -inf  ;;  %v1695_v16 = vrot.slane %v1694_v1, 1 }
 0x2e5   : > { %v3387_v26 = vpop.f32.mrf.mxu0  ;;  %v1712_v34 = vmax.f32 %v1708_v35, %v1711_v36  ;;  %v1817_v36 = vmax.f32 %v4176_v24, 0.0  ;;  %v1820_v35 = vmax.f32 %v4168_v14, 0.0  ;;  %v1821_v24 = vmax.f32 %v4180_v12, 0.0 }
 0x2e6   : > { %v4250_v15 = vadd.f32 %v3387_v26, %v1637_v33  ;;  %v1709_v58 = vsel %vm1152_vm4, %v4242_v55, -inf  ;;  %v1696_v26 = vmax.f32 %v1694_v1, %v1695_v16  ;;  %v1825_v14 = vmax.f32 %v4199_v49, 0.0 }
 0x2e7   : > { %v1588_v30 = vpop.f32.mrf.mxu0  ;;  %v1710_v37 = vmax.f32 %v1706_v60, %v1709_v58  ;;  %v1818_v58 = vmax.f32 %v4164_v10, 0.0  ;;  %v1822_v60 = vmax.f32 %v4174_v6, 0.0  ;;  %v1823_v10 = vmax.f32 %v4188_v11, 0.0 }
 0x2e8   : > { %v4256_v53 = vadd.f32 %v1637_v33, %v1588_v30  ;;  %v1715_v5 = vsel %vm1152_vm4, %v4250_v15, -inf  ;;  %v1843_v30 = vld [vmem:[%s4636_s8 + $0x8] sm:$0xff]  ;;  %v1827_v6 = vmax.f32 %v4207_v3, 0.0  ;;  %v1828_v12 = vmax.f32 %v4203_v47, 0.0 }
 0x2e9   : > { %v3390_v59 = vpop.f32.mrf.mxu0  ;;  %v1716_v41 = vmax.f32 %v1712_v34, %v1715_v5  ;;  %v1830_v11 = vmax.f32 %v4228_v61, 0.0  ;;  %v1832_v49 = vmax.f32 %v4224_v51, 0.0  ;;  %v1833_v47 = vmax.f32 %v4222_v50, 0.0  ;;  %v4355_v5 = vld [vmem:[%s4639_s11 + $0x18] sm:$0xff] }
 0x2ea   : > { %v1713_v18 = vsel %vm1152_vm4, %v4256_v53, -inf  ;;  %v4262_v27 = vadd.f32 %v3390_v59, %v1637_v33  ;;  %v1824_v59 = vmax.f32 %v4184_v4, 0.0  ;;  %v1829_v4 = vmax.f32 %v4220_v44, 0.0 }
 0x2eb   : > { %v1598_v38 = vpop.f32.mrf.mxu0  ;;  %v1714_v43 = vmax.f32 %v1710_v37, %v1713_v18  ;;  %v1834_v3 = vmax.f32 %v4232_v0, 0.0  ;;  %v1835_v44 = vmax.f32 %v4230_v63, 0.0  ;;  %v1836_v61 = vmax.f32 %v4242_v55, 0.0  ;;  %v2244_v55 = vld [vmem:[%s4640_s12 + $0x10] sm:$0xff]  ;;  %v3004_v37 = vld [vmem:[%s4638_s10] ss:$0 sm:$0xff] }
 0x2ec   : > { %v1719_v39 = vsel %vm1152_vm4, %v4262_v27, -inf  ;;  %v4266_v40 = vadd.f32 %v1637_v33, %v1598_v38  ;;  %v1728_v33 = vmax.f32 %v1696_v26, 0.0  ;;  %v1838_v51 = vmax.f32 %v4256_v53, 0.0  ;;  %v2242_v53 = vld [vmem:[%s4640_s12] sm:$0xff] }
 0x2ed   : > { %v1720_v54 = vmax.f32 %v1716_v41, %v1719_v39  ;;  %v1839_v50 = vmax.f32 %v4250_v15, 0.0  ;;  %v1841_v63 = vmax.f32 %v4262_v27, 0.0  ;;  %v2243_v15 = vld [vmem:[%s4640_s12 + $0x8] sm:$0xff] }
 0x2ee   : > { %v1717_v45 = vsel %vm1152_vm4, %v4266_v40, -inf  ;;  %v1840_v0 = vmax.f32 %v4266_v40, 0.0 }
 0x2ef   : > { %v1718_v56 = vmax.f32 %v1714_v43, %v1717_v45 }
 0x2f1   : > { %v1721_v57 = vmax.f32 %v1720_v54, %v1718_v56 }
 0x2f3   : > { %v1722_v2 = vrot.slane %v1721_v57, 4 }
 0x2f5   : > { %v1723_v8 = vmax.f32 %v1721_v57, %v1722_v2 }
 0x2f7   : > { %v1724_v20 = vrot.slane %v1723_v8, 2 }
 0x2f9   : > { %v1725_v25 = vmax.f32 %v1723_v8, %v1724_v20 }
 0x2fb   : > { %v1726_v29 = vrot.slane %v1725_v25, 1 }
 0x2fd   : > { %v1727_v7 = vmax.f32 %v1725_v25, %v1726_v29 }
 0x2ff   : > { %v1729_v9 = vmax.f32 %v1727_v7, 0.0 }
 0x301   : > { %v1743_v23 = vsel %vm1230_vm5, %v1729_v9, %v1728_v33 }
 0x302   : > { %3400 = vmatmul.mubr.msk.f32.vlgmr.msra.gmra.mxu1 %vm1152_vm4, %v1743_v23 }
 0x303   : > { %3403 = vmatpush3.msra.mxu1 %v4151_v31  ;;  %3410 = vmatprep.mubr.msk.f32.mxu1 %vm1152_vm4, %v1816_v21  ;;  %v1819_v31 = vmax.f32 %v4170_v19, 0.0  ;;  %v1826_v19 = vmax.f32 %v4192_v17, 0.0  ;;  %v1831_v17 = vmax.f32 %v4218_v42, 0.0  ;;  %v1837_v42 = vmax.f32 %v4240_v22, 0.0  ;;  %v2245_v22 = vld [vmem:[%s4640_s12 + $0x18] sm:$0xff] }
 0x304   : > { %3404 = vmatprep.subr.mxu1 %v1844_v28  ;;  %3450 = vmatpush3.msra.mxu0 %v2245_v22 }
 0x305   : > { %3405 = vmatpush3.msra.mxu1 %v1844_v28  ;;  %3451 = vmatprep.subr.mxu0 %v3625_v52 }
 0x306   : > { %3406 = vmatprep.subr.mxu1 %v1843_v30  ;;  %3452 = vmatpush3.msra.mxu0 %v2244_v55 }
 0x307   : > { %3407 = vmatpush3.msra.mxu1 %v1843_v30  ;;  %3453 = vmatprep.subr.mxu0 %v3625_v52 }
 0x308   : > { %3408 = vmatprep.subr.mxu1 %v1842_v13  ;;  %3454 = vmatpush3.msra.mxu0 %v2243_v15 }
 0x309   : > { %3409 = vmatpush3.msra.mxu1 %v1842_v13  ;;  %3455 = vmatprep.subr.mxu0 %v3625_v52 }
 0x30a   : > { %3411 = vmatmul.mubr.msk.f32.vlgmr.msra.gmra.mxu1 %vm1152_vm4, %v1817_v36  ;;  %3507 = vmatprep.subr.mxu1 %v3625_v52 }
 0x30b   : > { %3413 = vmatprep.mubr.msk.f32.mxu1 %vm1152_vm4, %v1818_v58  ;;  %3456 = vmatpush3.msra.mxu0 %v2242_v53 }
 0x30c   : > { %3460 = vmatprep.subr.mxu0 %v4355_v5 }
 0x30e   : > { %3414 = vmatmul.mubr.msk.f32.gmra.mxu1 %vm1152_vm4, %v1819_v31 }
 0x30f   : > { %3416 = vmatprep.mubr.msk.f32.mxu1 %vm1152_vm4, %v1820_v35 }
 0x312   : > { %3417 = vmatmul.mubr.msk.f32.gmra.mxu1 %vm1152_vm4, %v1821_v24 }
 0x313   : > { %3419 = vmatprep.mubr.msk.f32.mxu1 %vm1152_vm4, %v1822_v60 }
 0x316   : > { %3420 = vmatmul.mubr.msk.f32.gmra.mxu1 %vm1152_vm4, %v1823_v10 }
 0x317   : > { %3422 = vmatprep.mubr.msk.f32.mxu1 %vm1152_vm4, %v1824_v59 }
 0x31a   : > { %3423 = vmatmul.mubr.msk.f32.gmra.mxu1 %vm1152_vm4, %v1825_v14 }
 0x31b   : > { %3425 = vmatprep.mubr.msk.f32.mxu1 %vm1152_vm4, %v1826_v19 }
 0x31e   : > { %3426 = vmatmul.mubr.msk.f32.gmra.mxu1 %vm1152_vm4, %v1827_v6 }
 0x31f   : > { %3428 = vmatprep.mubr.msk.f32.mxu1 %vm1152_vm4, %v1828_v12 }
 0x322   : > { %3429 = vmatmul.mubr.msk.f32.gmra.mxu1 %vm1152_vm4, %v1829_v4 }
 0x323   : > { %3431 = vmatprep.mubr.msk.f32.mxu1 %vm1152_vm4, %v1830_v11 }
 0x326   : > { %3432 = vmatmul.mubr.msk.f32.gmra.mxu1 %vm1152_vm4, %v1831_v17 }
 0x327   : > { %3434 = vmatprep.mubr.msk.f32.mxu1 %vm1152_vm4, %v1832_v49 }
 0x32a   : > { %3435 = vmatmul.mubr.msk.f32.gmra.mxu1 %vm1152_vm4, %v1833_v47 }
 0x32b   : > { %3437 = vmatprep.mubr.msk.f32.mxu1 %vm1152_vm4, %v1834_v3 }
 0x32e   : > { %3438 = vmatmul.mubr.msk.f32.gmra.mxu1 %vm1152_vm4, %v1835_v44 }
 0x32f   : > { %3440 = vmatprep.mubr.msk.f32.mxu1 %vm1152_vm4, %v1836_v61 }
 0x332   : > { %3441 = vmatmul.mubr.msk.f32.gmra.mxu1 %vm1152_vm4, %v1837_v42 }
 0x333   : > { %3443 = vmatprep.mubr.msk.f32.mxu1 %vm1152_vm4, %v1838_v51 }
 0x336   : > { %3444 = vmatmul.mubr.msk.f32.gmra.mxu1 %vm1152_vm4, %v1839_v50 }
 0x337   : > { %3446 = vmatprep.mubr.msk.f32.mxu1 %vm1152_vm4, %v1840_v0 }
 0x33a   : > { %3447 = vmatmul.mubr.msk.f32.gmra.mxu1 %vm1152_vm4, %v1841_v63 }
 0x33b   : > { %3515 = vmatprep.mubr.msk.f32.mxu1 %vm3626_vm3, %v3625_v52 }
 0x3c2   : > { %v1812_v18 = vpop.f32.mrf.mxu1 }
 0x3c3   : > { %v1813_v40 = vadd.f32 %v3004_v37, %v1812_v18 }
 0x3c4   : > { %v3401_v27 = vpop.f32.mrf.mxu1 }
 0x3c5   : > { %v2126_v45 = vrot.slane %v1813_v40, %v4157_v48 }
 0x3c7   : > { %v2134_v56 = vrot.slane %v2126_v45, %v4157_v48  ;;  %v2127_v21 = vcombine.high %v2126_v45, %v2126_v45 }
 0x3c9   : > { %v2145_v2 = vrot.slane %v2134_v56, %v4161_v62  ;;  %v2141_v14 = vrot.slane %v2127_v21, %v4157_v48 }
 0x3ca   : > { %v3412_v32 = vpop.f32.mrf.mxu1 }
 0x3cb   : > { %v4376_v23 = vadd.f32 %v3412_v32, %v2145_v2  ;;  %v2149_v22 = vrot.slane %v2141_v14, %v4161_v62 }
 0x3cc   : > { %v1990_v34 = vpop.f32.mrf.mxu1 }
 0x3cd   : > { %v4366_v25 = vadd.f32 %v2145_v2, %v1990_v34  ;;  %v2179_v19 = vsel %vm1152_vm4, %v4376_v23, -inf }
 0x3ce   : > { %v3415_v38 = vpop.f32.mrf.mxu1 }
 0x3cf   : > { %v4370_v7 = vadd.f32 %v3415_v38, %v2145_v2  ;;  %v2178_v30 = vsel %vm1152_vm4, %v4366_v25, -inf }
 0x3d0   : > { %v2000_v39 = vpop.f32.mrf.mxu1 }
 0x3d1   : > { %v4364_v16 = vadd.f32 %v2145_v2, %v2000_v39  ;;  %v2182_v24 = vsel %vm1152_vm4, %v4370_v7, -inf }
 0x3d2   : > { %v3418_v41 = vpop.f32.mrf.mxu1  ;;  %v2183_v47 = vmax.f32 %v2179_v19, %v2182_v24 }
 0x3d3   : > { %v2180_v33 = vsel %vm1152_vm4, %v4364_v16, -inf  ;;  %v4380_v13 = vadd.f32 %v3418_v41, %v2145_v2 }
 0x3d4   : > { %v2010_v43 = vpop.f32.mrf.mxu1  ;;  %v2181_v31 = vmax.f32 %v2178_v30, %v2180_v33 }
 0x3d5   : > { %v4368_v26 = vadd.f32 %v2145_v2, %v2010_v43  ;;  %v2186_v4 = vsel %vm1152_vm4, %v4380_v13, -inf }
 0x3d6   : > { %v3421_v46 = vpop.f32.mrf.mxu1  ;;  %v2187_v50 = vmax.f32 %v2183_v47, %v2186_v4 }
 0x3d7   : > { %v2184_v36 = vsel %vm1152_vm4, %v4368_v26, -inf  ;;  %v4388_v60 = vadd.f32 %v3421_v46, %v2145_v2 }
 0x3d8   : > { %v2020_v54 = vpop.f32.mrf.mxu1  ;;  %v2185_v6 = vmax.f32 %v2181_v31, %v2184_v36 }
 0x3d9   : > { %v4374_v9 = vadd.f32 %v2145_v2, %v2020_v54  ;;  %v2190_v61 = vsel %vm1152_vm4, %v4388_v60, -inf }
 0x3da   : > { %v3424_v57 = vpop.f32.mrf.mxu1  ;;  %v2191_v53 = vmax.f32 %v2187_v50, %v2190_v61 }
 0x3db   : > { %v2188_v10 = vsel %vm1152_vm4, %v4374_v9, -inf  ;;  %v4399_v11 = vadd.f32 %v3424_v57, %v2145_v2 }
 0x3dc   : > { %v2030_v1 = vpop.f32.mrf.mxu1  ;;  %v2189_v3 = vmax.f32 %v2185_v6, %v2188_v10 }
 0x3dd   : > { %v4384_v58 = vadd.f32 %v2145_v2, %v2030_v1  ;;  %v2194_v55 = vsel %vm1152_vm4, %v4399_v11, -inf }
 0x3de   : > { %v3427_v8 = vpop.f32.mrf.mxu1  ;;  %v2195_v37 = vmax.f32 %v2191_v53, %v2194_v55 }
 0x3df   : > { %v2192_v17 = vsel %vm1152_vm4, %v4384_v58, -inf  ;;  %v4407_v42 = vadd.f32 %v3427_v8, %v2145_v2 }
 0x3e0   : > { %v2040_v20 = vpop.f32.mrf.mxu1  ;;  %v2193_v0 = vmax.f32 %v2189_v3, %v2192_v17 }
 0x3e1   : > { %v4392_v59 = vadd.f32 %v2145_v2, %v2040_v20  ;;  %v2198_v32 = vsel %vm1152_vm4, %v4407_v42, -inf }
 0x3e2   : > { %v3430_v29 = vpop.f32.mrf.mxu1  ;;  %v2199_v45 = vmax.f32 %v2195_v37, %v2198_v32 }
 0x3e3   : > { %v2196_v51 = vsel %vm1152_vm4, %v4392_v59, -inf  ;;  %v4420_v38 = vadd.f32 %v3430_v29, %v2149_v22 }
 0x3e4   : > { %v2050_v28 = vpop.f32.mrf.mxu1  ;;  %v2197_v18 = vmax.f32 %v2193_v0, %v2196_v51 }
 0x3e5   : > { %v4403_v49 = vadd.f32 %v2145_v2, %v2050_v28  ;;  %v2209_v2 = vsel %vm1152_vm4, %v4420_v38, -inf }
 0x3e6   : > { %v3433_v35 = vpop.f32.mrf.mxu1 }
 0x3e7   : > { %v2200_v15 = vsel %vm1152_vm4, %v4403_v49, -inf  ;;  %v4418_v34 = vadd.f32 %v3433_v35, %v2149_v22 }
 0x3e8   : > { %v2060_v12 = vpop.f32.mrf.mxu1  ;;  %v2201_v39 = vmax.f32 %v2197_v18, %v2200_v15 }
 0x3e9   : > { %v2211_v54 = vsel %vm1152_vm4, %v4418_v34, -inf  ;;  %v4428_v56 = vadd.f32 %v2149_v22, %v2060_v12 }
 0x3ea   : > { %v3436_v44 = vpop.f32.mrf.mxu1  ;;  %v2202_v8 = vmax.f32 %v2201_v39, %v2199_v45  ;;  %v2212_v30 = vmax.f32 %v2209_v2, %v2211_v54 }
 0x3eb   : > { %v4422_v41 = vadd.f32 %v3436_v44, %v2149_v22  ;;  %v2210_v31 = vsel %vm1152_vm4, %v4428_v56, -inf }
 0x3ec   : > { %v2070_v63 = vpop.f32.mrf.mxu1  ;;  %v2203_v14 = vrot.slane %v2202_v8, 4 }
 0x3ed   : > { %v4424_v43 = vadd.f32 %v2149_v22, %v2070_v63  ;;  %v2215_v29 = vsel %vm1152_vm4, %v4422_v41, -inf }
 0x3ee   : > { %v3439_v27 = vpop.f32.mrf.mxu1  ;;  %v2216_v19 = vmax.f32 %v2212_v30, %v2215_v29  ;;  %v2204_v63 = vmax.f32 %v2202_v8, %v2203_v14  ;;  %v2328_v14 = vmax.f32 %v4366_v25, 0.0  ;;  %v2354_v25 = vld [vmem:[%s4639_s11] sm:$0xff] }
 0x3ef   : > { %v4430_v57 = vadd.f32 %v3439_v27, %v2149_v22  ;;  %v2213_v33 = vsel %vm1152_vm4, %v4424_v43, -inf }
 0x3f0   : > { %v2080_v40 = vpop.f32.mrf.mxu1  ;;  %v2214_v6 = vmax.f32 %v2210_v31, %v2213_v33 }
 0x3f1   : > { %v4432_v1 = vadd.f32 %v2149_v22, %v2080_v40  ;;  %v2219_v35 = vsel %vm1152_vm4, %v4430_v57, -inf  ;;  %v2205_v40 = vrot.slane %v2204_v63, 2 }
 0x3f2   : > { %v3442_v46 = vpop.f32.mrf.mxu1  ;;  %v2220_v3 = vmax.f32 %v2216_v19, %v2219_v35 }
 0x3f3   : > { %v4440_v21 = vadd.f32 %v3442_v46, %v2149_v22  ;;  %v2217_v24 = vsel %vm1152_vm4, %v4432_v1, -inf  ;;  %v2206_v2 = vmax.f32 %v2204_v63, %v2205_v40 }
 0x3f4   : > { %v2090_v20 = vpop.f32.mrf.mxu1  ;;  %v2218_v44 = vmax.f32 %v2214_v6, %v2217_v24  ;;  %v2356_v6 = vld [vmem:[%s4639_s11 + $0x10] sm:$0xff] }
 0x3f5   : > { %v4442_v28 = vadd.f32 %v2149_v22, %v2090_v20  ;;  %v2223_v4 = vsel %vm1152_vm4, %v4440_v21, -inf  ;;  %v2207_v29 = vrot.slane %v2206_v2, 1 }
 0x3f6   : > { %v3445_v36 = vpop.f32.mrf.mxu1  ;;  %v2224_v55 = vmax.f32 %v2220_v3, %v2223_v4  ;;  %v2329_v4 = vmax.f32 %v4376_v23, 0.0  ;;  %v2332_v3 = vmax.f32 %v4368_v26, 0.0  ;;  %v2334_v23 = vmax.f32 %v4374_v9, 0.0 }
 0x3f7   : > { %v4450_v10 = vadd.f32 %v3445_v36, %v2149_v22  ;;  %v2221_v17 = vsel %vm1152_vm4, %v4442_v28, -inf  ;;  %v2208_v36 = vmax.f32 %v2206_v2, %v2207_v29  ;;  %v2337_v26 = vmax.f32 %v4399_v11, 0.0 }
 0x3f8   : > { %v2100_v12 = vpop.f32.mrf.mxu1  ;;  %v2222_v15 = vmax.f32 %v2218_v44, %v2221_v17  ;;  %v2330_v17 = vmax.f32 %v4364_v16, 0.0  ;;  %v2333_v44 = vmax.f32 %v4380_v13, 0.0  ;;  %v2335_v16 = vmax.f32 %v4388_v60, 0.0 }
 0x3f9   : > { %v4456_v47 = vadd.f32 %v2149_v22, %v2100_v12  ;;  %v2227_v51 = vsel %vm1152_vm4, %v4450_v10, -inf  ;;  %v2355_v12 = vld [vmem:[%s4639_s11 + $0x8] sm:$0xff]  ;;  %v2339_v9 = vmax.f32 %v4407_v42, 0.0  ;;  %v2340_v13 = vmax.f32 %v4403_v49, 0.0 }
 0x3fa   : > { %v3448_v61 = vpop.f32.mrf.mxu1  ;;  %v2228_v32 = vmax.f32 %v2224_v55, %v2227_v51  ;;  %v2342_v60 = vmax.f32 %v4428_v56, 0.0  ;;  %v2344_v11 = vmax.f32 %v4424_v43, 0.0  ;;  %v2345_v49 = vmax.f32 %v4422_v41, 0.0  ;;  %v3032_v55 = vld [vmem:[%s4641_s13] ss:$0 sm:$0xff] }
 0x3fb   : > { %v2225_v50 = vsel %vm1152_vm4, %v4456_v47, -inf  ;;  %v4462_v0 = vadd.f32 %v3448_v61, %v2149_v22  ;;  %v2336_v61 = vmax.f32 %v4384_v58, 0.0  ;;  %v2341_v58 = vmax.f32 %v4420_v38, 0.0 }
 0x3fc   : > { %v2110_v53 = vpop.f32.mrf.mxu1  ;;  %v2226_v37 = vmax.f32 %v2222_v15, %v2225_v50  ;;  %v2346_v42 = vmax.f32 %v4432_v1, 0.0  ;;  %v2347_v38 = vmax.f32 %v4430_v57, 0.0  ;;  %v2348_v56 = vmax.f32 %v4442_v28, 0.0  ;;  %v2756_v28 = vld [vmem:[%s4642_s14 + $0x10] sm:$0xff] }
 0x3fd   : > { %v2231_v18 = vsel %vm1152_vm4, %v4462_v0, -inf  ;;  %v4466_v27 = vadd.f32 %v2149_v22, %v2110_v53  ;;  %v2240_v22 = vmax.f32 %v2208_v36, 0.0  ;;  %v2350_v43 = vmax.f32 %v4456_v47, 0.0  ;;  %v2754_v47 = vld [vmem:[%s4642_s14] sm:$0xff] }
 0x3fe   : > { %v2232_v45 = vmax.f32 %v2228_v32, %v2231_v18  ;;  %v2351_v41 = vmax.f32 %v4450_v10, 0.0  ;;  %v2353_v57 = vmax.f32 %v4462_v0, 0.0  ;;  %v2755_v10 = vld [vmem:[%s4642_s14 + $0x8] sm:$0xff] }
 0x3ff   : > { %v2229_v39 = vsel %vm1152_vm4, %v4466_v27, -inf  ;;  %v2352_v1 = vmax.f32 %v4466_v27, 0.0 }
 0x400   : > { %v2230_v46 = vmax.f32 %v2226_v37, %v2229_v39 }
 0x402   : > { %v2233_v54 = vmax.f32 %v2232_v45, %v2230_v46 }
 0x404   : > { %v2234_v20 = vrot.slane %v2233_v54, 4 }
 0x406   : > { %v2235_v8 = vmax.f32 %v2233_v54, %v2234_v20 }
 0x408   : > { %v2236_v33 = vrot.slane %v2235_v8, 2 }
 0x40a   : > { %v2237_v30 = vmax.f32 %v2235_v8, %v2236_v33 }
 0x40c   : > { %v2238_v31 = vrot.slane %v2237_v30, 1 }
 0x40e   : > { %v2239_v35 = vmax.f32 %v2237_v30, %v2238_v31 }
 0x410   : > { %v2241_v24 = vmax.f32 %v2239_v35, 0.0 }
 0x412   : > { %v2255_v19 = vsel %vm1230_vm5, %v2241_v24, %v2240_v22 }
 0x413   : > { %3458 = vmatmul.mubr.msk.f32.vlgmr.msra.gmra.mxu0 %vm1152_vm4, %v2255_v19 }
 0x414   : > { %3461 = vmatpush3.msra.mxu0 %v4355_v5  ;;  %3468 = vmatprep.mubr.msk.f32.mxu0 %vm1152_vm4, %v2328_v14  ;;  %v2331_v5 = vmax.f32 %v4370_v7, 0.0  ;;  %v2338_v7 = vmax.f32 %v4392_v59, 0.0  ;;  %v2343_v59 = vmax.f32 %v4418_v34, 0.0  ;;  %v2349_v34 = vmax.f32 %v4440_v21, 0.0  ;;  %v2757_v21 = vld [vmem:[%s4642_s14 + $0x18] sm:$0xff] }
 0x415   : > { %3462 = vmatprep.subr.mxu0 %v2356_v6  ;;  %3508 = vmatpush3.msra.mxu1 %v2757_v21 }
 0x416   : > { %3463 = vmatpush3.msra.mxu0 %v2356_v6  ;;  %3509 = vmatprep.subr.mxu1 %v3625_v52 }
 0x417   : > { %3464 = vmatprep.subr.mxu0 %v2355_v12  ;;  %3510 = vmatpush3.msra.mxu1 %v2756_v28 }
 0x418   : > { %3465 = vmatpush3.msra.mxu0 %v2355_v12  ;;  %3511 = vmatprep.subr.mxu1 %v3625_v52 }
 0x419   : > { %3466 = vmatprep.subr.mxu0 %v2354_v25  ;;  %3512 = vmatpush3.msra.mxu1 %v2755_v10 }
 0x41a   : > { %3467 = vmatpush3.msra.mxu0 %v2354_v25  ;;  %3513 = vmatprep.subr.mxu1 %v3625_v52 }
 0x41b   : > { %3469 = vmatmul.mubr.msk.f32.vlgmr.msra.gmra.mxu0 %vm1152_vm4, %v2329_v4  ;;  %3514 = vmatpush3.msra.mxu1 %v2754_v47 }
 0x41c   : > { %3471 = vmatprep.mubr.msk.f32.mxu0 %vm1152_vm4, %v2330_v17 }
 0x41f   : > { %3472 = vmatmul.mubr.msk.f32.gmra.mxu0 %vm1152_vm4, %v2331_v5 }
 0x420   : > { %3474 = vmatprep.mubr.msk.f32.mxu0 %vm1152_vm4, %v2332_v3 }
 0x423   : > { %3475 = vmatmul.mubr.msk.f32.gmra.mxu0 %vm1152_vm4, %v2333_v44 }
 0x424   : > { %3477 = vmatprep.mubr.msk.f32.mxu0 %vm1152_vm4, %v2334_v23 }
 0x427   : > { %3478 = vmatmul.mubr.msk.f32.gmra.mxu0 %vm1152_vm4, %v2335_v16 }
 0x428   : > { %3480 = vmatprep.mubr.msk.f32.mxu0 %vm1152_vm4, %v2336_v61 }
 0x42b   : > { %3481 = vmatmul.mubr.msk.f32.gmra.mxu0 %vm1152_vm4, %v2337_v26 }
 0x42c   : > { %3483 = vmatprep.mubr.msk.f32.mxu0 %vm1152_vm4, %v2338_v7 }
 0x42f   : > { %3484 = vmatmul.mubr.msk.f32.gmra.mxu0 %vm1152_vm4, %v2339_v9 }
 0x430   : > { %3486 = vmatprep.mubr.msk.f32.mxu0 %vm1152_vm4, %v2340_v13 }
 0x433   : > { %3487 = vmatmul.mubr.msk.f32.gmra.mxu0 %vm1152_vm4, %v2341_v58 }
 0x434   : > { %3489 = vmatprep.mubr.msk.f32.mxu0 %vm1152_vm4, %v2342_v60 }
 0x437   : > { %3490 = vmatmul.mubr.msk.f32.gmra.mxu0 %vm1152_vm4, %v2343_v59 }
 0x438   : > { %3492 = vmatprep.mubr.msk.f32.mxu0 %vm1152_vm4, %v2344_v11 }
 0x43b   : > { %3493 = vmatmul.mubr.msk.f32.gmra.mxu0 %vm1152_vm4, %v2345_v49 }
 0x43c   : > { %3495 = vmatprep.mubr.msk.f32.mxu0 %vm1152_vm4, %v2346_v42 }
 0x43f   : > { %3496 = vmatmul.mubr.msk.f32.gmra.mxu0 %vm1152_vm4, %v2347_v38 }
 0x440   : > { %3498 = vmatprep.mubr.msk.f32.mxu0 %vm1152_vm4, %v2348_v56 }
 0x443   : > { %3499 = vmatmul.mubr.msk.f32.gmra.mxu0 %vm1152_vm4, %v2349_v34 }
 0x444   : > { %3501 = vmatprep.mubr.msk.f32.mxu0 %vm1152_vm4, %v2350_v43 }
 0x447   : > { %3502 = vmatmul.mubr.msk.f32.gmra.mxu0 %vm1152_vm4, %v2351_v41 }
 0x448   : > { %3504 = vmatprep.mubr.msk.f32.mxu0 %vm1152_vm4, %v2352_v1 }
 0x44b   : > { %3505 = vmatmul.mubr.msk.f32.gmra.mxu0 %vm1152_vm4, %v2353_v57 }
 0x4d3   : > { %v2324_v51 = vpop.f32.mrf.mxu0 }
 0x4d4   : > { %v2325_v18 = vadd.f32 %v3032_v55, %v2324_v51 }
 0x4d5   : > { %v3459_v50 = vpop.f32.mrf.mxu0 }
 0x4d6   : > { %v2638_v52 = vrot.slane %v2325_v18, %v4157_v48 }
 0x4d8   : > { %v2646_v40 = vrot.slane %v2638_v52, %v4157_v48  ;;  %v2639_v22 = vcombine.high %v2638_v52, %v2638_v52 }
 0x4da   : > { %v2657_v54 = vrot.slane %v2646_v40, %v4161_v62  ;;  %v2653_v16 = vrot.slane %v2639_v22, %v4157_v48 }
 0x4db   : > { %v3470_v0 = vpop.f32.mrf.mxu0 }
 0x4dc   : > { %v2665_v24 = vadd.f32 %v3470_v0, %v2657_v54  ;;  %v2661_v41 = vrot.slane %v2653_v16, %v4161_v62 }
 0x4dd   : > { %v2502_v63 = vpop.f32.mrf.mxu0 }
 0x4de   : > { %v2664_v29 = vadd.f32 %v2657_v54, %v2502_v63  ;;  %v2691_v61 = vsel %vm1152_vm4, %v2665_v24, -inf }
 0x4df   : > { %v3473_v15 = vpop.f32.mrf.mxu0 }
 0x4e0   : > { %v2667_v36 = vadd.f32 %v3473_v15, %v2657_v54  ;;  %v2690_v19 = vsel %vm1152_vm4, %v2664_v29, -inf }
 0x4e1   : > { %v2512_v53 = vpop.f32.mrf.mxu0 }
 0x4e2   : > { %v2666_v20 = vadd.f32 %v2657_v54, %v2512_v53  ;;  %v2694_v5 = vsel %vm1152_vm4, %v2667_v36, -inf }
 0x4e3   : > { %v3476_v27 = vpop.f32.mrf.mxu0  ;;  %v2695_v59 = vmax.f32 %v2691_v61, %v2694_v5 }
 0x4e4   : > { %v2692_v31 = vsel %vm1152_vm4, %v2666_v20, -inf  ;;  %v2669_v6 = vadd.f32 %v3476_v27, %v2657_v54 }
 0x4e5   : > { %v2522_v32 = vpop.f32.mrf.mxu0  ;;  %v2693_v4 = vmax.f32 %v2690_v19, %v2692_v31 }
 0x4e6   : > { %v2668_v33 = vadd.f32 %v2657_v54, %v2522_v32  ;;  %v2698_v9 = vsel %vm1152_vm4, %v2669_v6, -inf }
 0x4e7   : > { %v3479_v37 = vpop.f32.mrf.mxu0  ;;  %v2699_v34 = vmax.f32 %v2695_v59, %v2698_v9 }
 0x4e8   : > { %v2696_v12 = vsel %vm1152_vm4, %v2668_v33, -inf  ;;  %v2671_v3 = vadd.f32 %v3479_v37, %v2657_v54 }
 0x4e9   : > { %v2532_v39 = vpop.f32.mrf.mxu0  ;;  %v2697_v26 = vmax.f32 %v2693_v4, %v2696_v12 }
 0x4ea   : > { %v2670_v35 = vadd.f32 %v2657_v54, %v2532_v39  ;;  %v2702_v42 = vsel %vm1152_vm4, %v2671_v3, -inf }
 0x4eb   : > { %v3482_v45 = vpop.f32.mrf.mxu0  ;;  %v2703_v21 = vmax.f32 %v2699_v34, %v2702_v42 }
 0x4ec   : > { %v2700_v44 = vsel %vm1152_vm4, %v2670_v35, -inf  ;;  %v2673_v13 = vadd.f32 %v3482_v45, %v2657_v54 }
 0x4ed   : > { %v2542_v46 = vpop.f32.mrf.mxu0  ;;  %v2701_v11 = vmax.f32 %v2697_v26, %v2700_v44 }
 0x4ee   : > { %v2672_v25 = vadd.f32 %v2657_v54, %v2542_v46  ;;  %v2706_v1 = vsel %vm1152_vm4, %v2673_v13, -inf }
 0x4ef   : > { %v3485_v2 = vpop.f32.mrf.mxu0  ;;  %v2707_v50 = vmax.f32 %v2703_v21, %v2706_v1 }
 0x4f0   : > { %v2704_v58 = vsel %vm1152_vm4, %v2672_v25, -inf  ;;  %v2675_v38 = vadd.f32 %v3485_v2, %v2657_v54 }
 0x4f1   : > { %v2552_v8 = vpop.f32.mrf.mxu0  ;;  %v2705_v48 = vmax.f32 %v2701_v11, %v2704_v58 }
 0x4f2   : > { %v2674_v23 = vadd.f32 %v2657_v54, %v2552_v8  ;;  %v2710_v47 = vsel %vm1152_vm4, %v2675_v38, -inf }
 0x4f3   : > { %v3488_v30 = vpop.f32.mrf.mxu0  ;;  %v2711_v18 = vmax.f32 %v2707_v50, %v2710_v47 }
 0x4f4   : > { %v2708_v56 = vsel %vm1152_vm4, %v2674_v23, -inf  ;;  %v2677_v0 = vadd.f32 %v3488_v30, %v2661_v41 }
 0x4f5   : > { %v2562_v14 = vpop.f32.mrf.mxu0  ;;  %v2709_v28 = vmax.f32 %v2705_v48, %v2708_v56 }
 0x4f6   : > { %v2676_v60 = vadd.f32 %v2657_v54, %v2562_v14  ;;  %v2721_v39 = vsel %vm1152_vm4, %v2677_v0, -inf }
 0x4f7   : > { %v3491_v17 = vpop.f32.mrf.mxu0 }
 0x4f8   : > { %v2712_v57 = vsel %vm1152_vm4, %v2676_v60, -inf  ;;  %v2679_v51 = vadd.f32 %v3491_v17, %v2661_v41 }
 0x4f9   : > { %v2572_v7 = vpop.f32.mrf.mxu0  ;;  %v2713_v63 = vmax.f32 %v2709_v28, %v2712_v57 }
 0x4fa   : > { %v2723_v62 = vsel %vm1152_vm4, %v2679_v51, -inf  ;;  %v2678_v32 = vadd.f32 %v2661_v41, %v2572_v7  ;;  %v3060_v51 = vld [vmem:[%s4643_s15] ss:$0 sm:$0xff] }
 0x4fb   : > { %v3494_v49 = vpop.f32.mrf.mxu0  ;;  %v2714_v40 = vmax.f32 %v2713_v63, %v2711_v18  ;;  %v2724_v8 = vmax.f32 %v2721_v39, %v2723_v62 }
 0x4fc   : > { %v2681_v15 = vadd.f32 %v3494_v49, %v2661_v41  ;;  %v2722_v33 = vsel %vm1152_vm4, %v2678_v32, -inf }
 0x4fd   : > { %v2582_v43 = vpop.f32.mrf.mxu0  ;;  %v2715_v35 = vrot.slane %v2714_v40, 4 }
 0x4fe   : > { %v2680_v53 = vadd.f32 %v2661_v41, %v2582_v43  ;;  %v2727_v46 = vsel %vm1152_vm4, %v2681_v15, -inf }
 0x4ff   : > { %v3497_v10 = vpop.f32.mrf.mxu0  ;;  %v2728_v22 = vmax.f32 %v2724_v8, %v2727_v46  ;;  %v2716_v23 = vmax.f32 %v2714_v40, %v2715_v35 }
 0x500   : > { %v2683_v52 = vadd.f32 %v3497_v10, %v2661_v41  ;;  %v2725_v54 = vsel %vm1152_vm4, %v2680_v53, -inf }
 0x501   : > { %v2592_v55 = vpop.f32.mrf.mxu0  ;;  %v2726_v24 = vmax.f32 %v2722_v33, %v2725_v54  ;;  %v2717_v59 = vrot.slane %v2716_v23, 2 }
 0x502   : > { %v2682_v37 = vadd.f32 %v2661_v41, %v2592_v55  ;;  %v2731_v30 = vsel %vm1152_vm4, %v2683_v52, -inf }
 0x503   : > { %v3500_v27 = vpop.f32.mrf.mxu0  ;;  %v2732_v25 = vmax.f32 %v2728_v22, %v2731_v30  ;;  %v2718_v38 = vmax.f32 %v2716_v23, %v2717_v59 }
 0x504   : > { %v2685_v2 = vadd.f32 %v3500_v27, %v2661_v41  ;;  %v2729_v36 = vsel %vm1152_vm4, %v2682_v37, -inf }
 0x505   : > { %v2602_v45 = vpop.f32.mrf.mxu0  ;;  %v2730_v4 = vmax.f32 %v2726_v24, %v2729_v36  ;;  %v2719_v48 = vrot.slane %v2718_v38, 1 }
 0x506   : > { %v2684_v20 = vadd.f32 %v2661_v41, %v2602_v45  ;;  %v2735_v19 = vsel %vm1152_vm4, %v2685_v2, -inf }
 0x507   : > { %v3503_v29 = vpop.f32.mrf.mxu0  ;;  %v2736_v16 = vmax.f32 %v2732_v25, %v2735_v19  ;;  %v2720_v57 = vmax.f32 %v2718_v38, %v2719_v48 }
 0x508   : > { %v2687_v31 = vadd.f32 %v3503_v29, %v2661_v41  ;;  %v2733_v6 = vsel %vm1152_vm4, %v2684_v20, -inf }
 0x509   : > { %v2612_v14 = vpop.f32.mrf.mxu0  ;;  %v2734_v61 = vmax.f32 %v2730_v4, %v2733_v6 }
 0x50a   : > { %v2686_v12 = vadd.f32 %v2661_v41, %v2612_v14  ;;  %v2739_v5 = vsel %vm1152_vm4, %v2687_v31, -inf }
 0x50b   : > { %v3506_v17 = vpop.f32.mrf.mxu0  ;;  %v2740_v13 = vmax.f32 %v2736_v16, %v2739_v5 }
 0x50c   : > { %v2737_v3 = vsel %vm1152_vm4, %v2686_v12, -inf  ;;  %v2689_v44 = vadd.f32 %v3506_v17, %v2661_v41 }
 0x50d   : > { %v2622_v26 = vpop.f32.mrf.mxu0  ;;  %v2738_v58 = vmax.f32 %v2734_v61, %v2737_v3 }
 0x50e   : > { %v2743_v7 = vsel %vm1152_vm4, %v2689_v44, -inf  ;;  %v2688_v9 = vadd.f32 %v2661_v41, %v2622_v26  ;;  %v2752_v41 = vmax.f32 %v2720_v57, 0.0 }
 0x50f   : > { %v2744_v11 = vmax.f32 %v2740_v13, %v2743_v7 }
 0x510   : > { %v2741_v60 = vsel %vm1152_vm4, %v2688_v9, -inf }
 0x511   : > { %v2742_v49 = vmax.f32 %v2738_v58, %v2741_v60 }
 0x513   : > { %v2745_v42 = vmax.f32 %v2744_v11, %v2742_v49 }
 0x515   : > { %v2746_v56 = vrot.slane %v2745_v42, 4 }
 0x517   : > { %v2747_v34 = vmax.f32 %v2745_v42, %v2746_v56 }
 0x519   : > { %v2748_v43 = vrot.slane %v2747_v34, 2 }
 0x51b   : > { %v2749_v1 = vmax.f32 %v2747_v34, %v2748_v43 }
 0x51d   : > { %v2750_v21 = vrot.slane %v2749_v1, 1 }
 0x51f   : > { %v2751_v28 = vmax.f32 %v2749_v1, %v2750_v21 }
 0x521   : > { %v2753_v10 = vmax.f32 %v2751_v28, 0.0 }
 0x523   : > { %v2767_v47 = vsel %vm1230_vm5, %v2753_v10, %v2752_v41 }
 0x524   : > { %3516 = vmatmul.mubr.msk.f32.vlgmr.msra.gmra.mxu1 %vm1152_vm4, %v2767_v47 }
 0x5e4   : > { %v2836_v50 = vpop.f32.mrf.mxu1 }
 0x5e5   : > { %v2837_v0 = vadd.f32 %v3060_v51, %v2836_v50 }
 0x5e6   : > { %v3517_v63 = vpop.f32.mrf.mxu1 }
 0x5e7   : > { %2840 = vst [vmem:[%s517_s18] sm:$0x3] %v2837_v0 }
 0x5e8   : > { %3576 = shalt.err (!%p3573_p3)
}
 0x5e9   : > { %s3577_s1 = scalar_lea.hbm %s4593_s2, 32  ;;  %s3581_s29 = scalar_lea.hbm %s4644_s16, 96 }
 0x5ea   : > { %p3578_p4 = scmp.ne.s32.totalorder %s4593_s2, %s3577_s1  ;;  %p3582_p9 = scmp.lt.s32.totalorder %s4593_s2, %s4644_s16 }
 0x5eb   : > { %p3583_p10 = scmp.lt.s32.totalorder %s3581_s29, %s3577_s1 }
 0x5ec   : > { %p3579_p7 = pnand %p3578_p4, %p3752_p5 }
 0x5ed   : > { %p3584_p11 = por %p3583_p10, %p3582_p9 }
 0x5ee   : > { %p3580_p8 = pneg %p3579_p7 }
 0x5f0   : > { %p3585_p12 = pnand %p3584_p11, %p3580_p8 }
 0x5f2   : > { %3588 = shalt.err (!%p3585_p12)
}
 0x5f3   : > { %3521 = dma.vmem_to_hbm [thread:$0]  (%p3752_p5), %s2856_s23, 32, %s4593_s2, %s2842_s3  }
 0x5f4 PF: > { %p3527_p13 = scmp.ge.s32.totalorder %s3623_s24, 2  ;;  %s2867_s4 = sand.u32 1, %s3611_s21  }
 0x5f5   : > { %s2868_s26 = scalar_lea.sflag [#allocation3], %s2867_s4 }
 0x5f6   : > { %p3524_p0 = pnand %p3527_p13, %p3756_p6 }
 0x5f8   : > { %p3525_p1 = pneg %p3524_p0 }
 0x5fa   : > { %3606 = dma.done.wait (%p3525_p1), %s2868_s26, 32  }
 0x5fb   : > { %3608 = vsyncadd (%p3525_p1), %s2868_s26, 4294967264  ;;  %s4660_s25 = sld [smem:[#allocation5_spill]]  ;;  %p26_p2 = scmp.ge.s32.totalorder %s3739_s27, 5  }
 0x5fc   : > { %s4661_s23 = sld [smem:[#allocation6_spill]]  ;;  %s4662_s21 = smov %s3615_s22 }
 0x5fd   : > { %s4664_s24 = smov %s3739_s27  ;;  %28 = sbr.rel (!%p26_p2) target bundleno = 9 (0x9), region = 119 }
 0x601   : > { %s4663_s22 = smov %s4660_s25 }
 0x602   :  { %2873 = vsyncpa [#allocation3], 1 }
 0x603   :  { %2875 = vsyncpa [#allocation3 + $0x1], 1 }

</bundles_post_ra>
